<compile_context>
chip_gen: v7x
topology: tpu7x:2x2x1
jax: 0.10.0
libtpu: 0.0.40
codegen_flags: <defaults>
</compile_context>

<pallas_src>
import functools

import jax
import jax.numpy as jnp
import numpy as np
from jax.experimental import pallas as pl
from jax.experimental.pallas import tpu as pltpu


_ACC_LANES = 256   # even-w outputs in lanes [0,128), odd-w outputs in [128,256)
_K = 5             # conv kernel size


# ------------------------------ Pallas kernel -------------------------------

def cnn_deep_kernel(x_ref, t1_ref, b1_ref, t2_ref, b2_ref, wf_ref, bf_ref,
                    out_ref, act2_ref, act3_ref, head_ref, *, batch):
    B = batch
    PB = 8 * B                       # rows per residue block in x_ref (p 7->8)
    RW = 7 * B                       # valid rows per plane: row = p*B + b

    # ---- layer 1: conv(1->8, 5x5, 'same') == ONE matmul ---------------------
    # x_ref rows = (r, p, b); lanes = 5 H-taps x 28 input cols (wrapper-built).
    acc1 = jnp.dot(x_ref[...], t1_ref[...],
                   preferred_element_type=jnp.float32)          # (4*PB, 256)

    # zero only the 'same'-H padding rows of act2 (plane rows -1 and 7).
    zrow = jnp.zeros((2, B, 128), act2_ref.dtype)
    act2_ref[:, pl.ds(0, B), :] = zrow
    act2_ref[:, pl.ds(8 * B, B), :] = zrow

    b1v = b1_ref[...]                                            # (1, 128)
    for r2 in range(2):              # pool-1 output row parity
        # H-pool: max of conv-row residues 2*r2 and 2*r2+1 (same (p, b)).
        hp = jnp.maximum(acc1[(2 * r2) * PB:(2 * r2 + 1) * PB, :],
                         acc1[(2 * r2 + 1) * PB:(2 * r2 + 2) * PB, :])
        # W-pool: max of the two 128-aligned lane halves (even-w | odd-w).
        wp = jnp.maximum(hp[:, :128], hp[:, 128:])
        # bias + ReLU commute with max-pool; drop the p=7 pad rows.
        a2 = jnp.maximum(wp[:RW, :] + b1v, 0.0)
        act2_ref[r2, pl.ds(B, RW), :] = a2.astype(act2_ref.dtype)

    # ---- layer 2: conv(8->12, 5x5, 'same') == 2 matmuls (K = 5*128) ---------
    acc2 = []
    for r2 in range(2):              # conv-2 output row parity
        blocks = []
        for ki in range(_K):
            s = r2 + ki - _K // 2
            ri, d = s % 2, s // 2    # input plane / plane-row shift
            blocks.append(act2_ref[ri, pl.ds((1 + d) * B, RW), :])
        lhs2 = jnp.concatenate(blocks, axis=1)                   # (RW, 640)
        acc2.append(jnp.dot(lhs2, t2_ref[...],
                            preferred_element_type=jnp.float32)) # (RW, 256)

    # pool-2: H-pool = max of the two parities, W-pool = max of lane halves.
    pooled = jnp.maximum(acc2[0], acc2[1])
    pooled = jnp.maximum(pooled[:, :128], pooled[:, 128:])
    act3_ref[...] = jnp.maximum(pooled + b2_ref[...], 0.0)       # (RW, 128)

    # ---- head: Linear(12*7*7 -> 10) == ONE matmul ---------------------------
    # Lay the 7 spatial rows out lane-densely at offsets p*128 -> (B, 896).
    for p in range(7):
        head_ref[:, pl.ds(p * 128, 128)] = act3_ref[pl.ds(p * B, B), :]
    out_ref[...] = jnp.dot(head_ref[...], wf_ref[...],
                           preferred_element_type=jnp.float32) + bf_ref[...]


# -------------------- one-time parameter preprocessing ----------------------

def _build_conv_matrix(w_torch, width):
    """Fold a 5x5 'same' conv (PyTorch OIHW weight) into 5 width-Toeplitz
    matrices (Cin*W, 256): output lanes = (w%2)*128 + co*(W//2) + w//2."""
    w = np.asarray(w_torch, np.float32)
    c_out, c_in, k, _ = w.shape
    w2 = width // 2
    wi = np.arange(width)
    wo = np.arange(width)
    kj = wi[:, None] - wo[None, :] + k // 2                 # W-tap index
    valid = (kj >= 0) & (kj < k)                            # 'same' W-padding
    g = w.transpose(2, 1, 3, 0)[:, :, np.clip(kj, 0, k - 1), :]
    g = g * valid[None, None, :, :, None]                   # (k,Cin,Wi,Wo,Cout)
    g = g.transpose(0, 1, 2, 4, 3).reshape(k, c_in * width, c_out, width)
    col = (wo[None, :] % 2) * 128 + np.arange(c_out)[:, None] * w2 + wo[None, :] // 2
    t = np.zeros((k, c_in * width, _ACC_LANES), np.float32)
    t[:, :, col] = g
    return t


def prepare_params(params):
    """One-time preprocessing of PyTorch-convention parameters (not per-call)."""
    w1, b1, w2, b2, wf, bf = [np.asarray(p, np.float32) for p in params]

    # conv1: 5 H-taps concatenated along K -> (140, 256), bf16 (MXU native).
    t1 = _build_conv_matrix(w1, width=28).reshape(_K * 28, _ACC_LANES)

    # conv2: per-tap K rows padded 112 -> 128 (lane-dense act2) -> (640, 256).
    t2 = _build_conv_matrix(w2, width=14)                   # (5, 112, 256)
    t2p = np.zeros((_K, 128, _ACC_LANES), np.float32)
    t2p[:, :112, :] = t2
    t2cat = t2p.reshape(_K * 128, _ACC_LANES)

    # biases expanded to the pooled lane layouts, zero-padded to 128 lanes.
    b1v = np.zeros((1, 128), np.float32)
    b1v[0, :112] = np.repeat(b1, 14)                        # lane = co*14 + w
    b2v = np.zeros((1, 128), np.float32)
    b2v[0, :84] = np.repeat(b2, 7)                          # lane = co*7 + w

    # FC weight: torch flatten (co, h, w) -> lane-dense rows h*128 + co*7 + w.
    wf4 = wf.reshape(10, 12, 7, 7).transpose(2, 1, 3, 0)    # (h, co, w, 10)
    wfb = np.zeros((7, 128, 10), np.float32)
    wfb[:, :84, :] = wf4.reshape(7, 84, 10)
    wfb = wfb.reshape(7 * 128, 10)
    bfv = bf.reshape(1, 10)

    return (jnp.asarray(t1, jnp.bfloat16), jnp.asarray(b1v),
            jnp.asarray(t2cat, jnp.bfloat16), jnp.asarray(b2v),
            jnp.asarray(wfb), jnp.asarray(bfv))


# --------------------------------- wrapper ----------------------------------

@jax.jit
def cnn_deep_forward(x_nchw, prepped):
    """Forward pass equivalent to CNN_DEEP.forward; x: (B, 1, 28, 28)."""
    t1, b1v, t2, b2v, wfb, bfv = prepped
    B, _, H, W = x_nchw.shape

    # Layout plumbing (tiny, wrapper-side): build the conv-1 LHS slab.
    # rows = r*8*B + p*B + b (residue r = h%4, p = h//4, p=7 is zero-pad),
    # lanes = ki*W + wi with the H-tap shift & 'same' H-padding pre-applied.
    x2 = x_nchw.reshape(B, H, W).astype(jnp.float32)
    xp = jnp.pad(x2, ((0, 0), (2, 2), (0, 0)))                  # 'same' H pad
    taps = jnp.stack([xp[:, ki:ki + H, :] for ki in range(_K)], axis=2)
    lhs = taps.reshape(B, H, _K * W)                            # (B, 28, 140)
    lhs = lhs.reshape(B, H // 4, 4, _K * W).transpose(2, 1, 0, 3)
    lhs = jnp.pad(lhs, ((0, 0), (0, 1), (0, 0), (0, 0)))        # p: 7 -> 8
    lhs = lhs.reshape(4 * 8 * B, _K * W).astype(jnp.bfloat16)   # (64, 140)

    vmem = pl.BlockSpec(memory_space=pltpu.MemorySpace.VMEM)
    # NOTE: at B=2 a single gridless call on one TensorCore is fastest; for
    # throughput-sized batches add a batch grid axis with
    # dimension_semantics=("parallel",) to engage both v7x TensorCores.
    return pl.pallas_call(
        functools.partial(cnn_deep_kernel, batch=B),
        out_shape=jax.ShapeDtypeStruct((B, 10), jnp.float32),
        in_specs=[vmem] * 7,
        out_specs=vmem,
        scratch_shapes=[
            pltpu.VMEM((2, 9 * B, 128), jnp.bfloat16),   # act2, H-'same' padded
            pltpu.VMEM((7 * B, 128), jnp.float32),       # act3 (final 7x7x12)
            pltpu.VMEM((B, 7 * 128), jnp.float32),       # lane-dense FC slab
        ],
    )(lhs, t1, b1v, t2, b2v, wfb, bfv)


# --------------------------- pure-JAX reference -----------------------------

def ref_forward(x_nchw, params):
    w1, b1, w2, b2, wf, bf = params

    def conv(x, w, b):
        y = jax.lax.conv_general_dilated(
            x, w, window_strides=(1, 1), padding=[(2, 2), (2, 2)],
            dimension_numbers=("NCHW", "OIHW", "NCHW"),
            precision=jax.lax.Precision.HIGHEST)
        return y + b[None, :, None, None]

    def pool(x):
        return jax.lax.reduce_window(
            x, -jnp.inf, jax.lax.max, (1, 1, 2, 2), (1, 1, 2, 2), "VALID")

    y = pool(jax.nn.relu(conv(x_nchw, w1, b1)))
    y = pool(jax.nn.relu(conv(y, w2, b2)))
    y = y.reshape(y.shape[0], -1)
    return jnp.dot(y, wf.T, precision=jax.lax.Precision.HIGHEST) + bf


# ----------------------------------- main ------------------------------------

if __name__ == "__main__":
    key = jax.random.PRNGKey(0)
    ks = jax.random.split(key, 7)

    B = 2
    # CNN_DEEP's Linear(12*7*7, 10) implies a 1x28x28 input.
    x = jax.random.normal(ks[0], (B, 1, 28, 28), dtype=jnp.float32)

    # Deterministic synthetic parameters (PyTorch shape conventions).
    w1 = 0.1 * jax.random.normal(ks[1], (8, 1, 5, 5), dtype=jnp.float32)
    b1 = 0.1 * jax.random.normal(ks[2], (8,), dtype=jnp.float32)
    w2 = 0.1 * jax.random.normal(ks[3], (12, 8, 5, 5), dtype=jnp.float32)
    b2 = 0.1 * jax.random.normal(ks[4], (12,), dtype=jnp.float32)
    wf = 0.1 * jax.random.normal(ks[5], (10, 12 * 7 * 7), dtype=jnp.float32)
    bf = 0.1 * jax.random.normal(ks[6], (10,), dtype=jnp.float32)
    params = (w1, b1, w2, b2, wf, bf)

    prepped = prepare_params(params)     # one-time weight preprocessing

    out = jax.block_until_ready(cnn_deep_forward(x, prepped))
    ref = jax.block_until_ready(ref_forward(x, params))

    assert out.shape == (B, 10) and out.dtype == jnp.float32
    # Conv layers run in bf16 on the MXU (f32 accumulation, f32 FC head);
    # expected error is well inside this tolerance for 0.1-scale weights.
    np.testing.assert_allclose(np.asarray(out), np.asarray(ref),
                               rtol=2e-2, atol=2e-2)
    print("KERNEL_OK")
</pallas_src>

<mosaic_0001>
module attributes {stable_mosaic.version = 11 : i64} {
  func.func @cnn_deep_kernel(%arg0: memref<64x140xbf16, #tpu.memory_space<vmem>>, %arg1: memref<140x256xbf16, #tpu.memory_space<vmem>>, %arg2: memref<1x128xf32, #tpu.memory_space<vmem>>, %arg3: memref<640x256xbf16, #tpu.memory_space<vmem>>, %arg4: memref<1x128xf32, #tpu.memory_space<vmem>>, %arg5: memref<896x10xf32, #tpu.memory_space<vmem>>, %arg6: memref<1x10xf32, #tpu.memory_space<vmem>>, %arg7: memref<2x10xf32, #tpu.memory_space<vmem>>, %arg8: memref<2x18x128xbf16, #tpu.memory_space<vmem>>, %arg9: memref<14x128xf32, #tpu.memory_space<vmem>>, %arg10: memref<2x896xf32, #tpu.memory_space<vmem>>) attributes {dimension_semantics = [], scalar_prefetch = 0 : i64, scratch_operands = 3 : i64, tpu.core_type = #tpu.core_type<tc>} {
    %c0 = arith.constant 0 : index
    %c0_0 = arith.constant 0 : index
    %0 = vector.load %arg0[%c0, %c0_0] : memref<64x140xbf16, #tpu.memory_space<vmem>>, vector<64x140xbf16>
    %c0_1 = arith.constant 0 : index
    %c0_2 = arith.constant 0 : index
    %1 = vector.load %arg1[%c0_1, %c0_2] : memref<140x256xbf16, #tpu.memory_space<vmem>>, vector<140x256xbf16>
    %cst = arith.constant dense<0.000000e+00> : vector<64x256xf32>
    %2 = tpu.matmul %0, %1, %cst {dimension_numbers = #tpu.dot_dimension_numbers<[1], [0], [0], [1], [0, 0, 1, 1], [], []>} : vector<64x140xbf16>, vector<140x256xbf16>, vector<64x256xf32> -> vector<64x256xf32>
    %cst_3 = arith.constant 0.000000e+00 : bf16
    %3 = vector.broadcast %cst_3 : bf16 to vector<2x2x128xbf16>
    %c0_4 = arith.constant 0 : index
    %c0_5 = arith.constant 0 : index
    %c0_6 = arith.constant 0 : index
    %4 = vector.load %arg8[%c0_4, %c0_5, %c0_6] : memref<2x18x128xbf16, #tpu.memory_space<vmem>>, vector<2x2x128xbf16>
    tpu.vector_store %arg8[%c0_4, %c0_5, %c0_6], %3 {strides = array<i32>} : memref<2x18x128xbf16, #tpu.memory_space<vmem>>, vector<2x2x128xbf16>,
    %c0_7 = arith.constant 0 : index
    %c16 = arith.constant 16 : index
    %c0_8 = arith.constant 0 : index
    %5 = vector.load %arg8[%c0_7, %c16, %c0_8] : memref<2x18x128xbf16, #tpu.memory_space<vmem>>, vector<2x2x128xbf16>
    tpu.vector_store %arg8[%c0_7, %c16, %c0_8], %3 {strides = array<i32>} : memref<2x18x128xbf16, #tpu.memory_space<vmem>>, vector<2x2x128xbf16>,
    %c0_9 = arith.constant 0 : index
    %c0_10 = arith.constant 0 : index
    %6 = vector.load %arg2[%c0_9, %c0_10] : memref<1x128xf32, #tpu.memory_space<vmem>>, vector<1x128xf32>
    %7 = vector.extract_strided_slice %2 {offsets = [0, 0], sizes = [16, 256], strides = [1, 1]} : vector<64x256xf32> to vector<16x256xf32>
    %8 = vector.extract_strided_slice %2 {offsets = [16, 0], sizes = [16, 256], strides = [1, 1]} : vector<64x256xf32> to vector<16x256xf32>
    %9 = arith.maximumf %7, %8 : vector<16x256xf32>
    %10 = vector.extract_strided_slice %9 {offsets = [0, 0], sizes = [16, 128], strides = [1, 1]} : vector<16x256xf32> to vector<16x128xf32>
    %11 = vector.extract_strided_slice %9 {offsets = [0, 128], sizes = [16, 128], strides = [1, 1]} : vector<16x256xf32> to vector<16x128xf32>
    %12 = arith.maximumf %10, %11 : vector<16x128xf32>
    %13 = vector.extract_strided_slice %12 {offsets = [0, 0], sizes = [14, 128], strides = [1, 1]} : vector<16x128xf32> to vector<14x128xf32>
    %14 = vector.broadcast %6 : vector<1x128xf32> to vector<14x128xf32>
    %15 = arith.addf %13, %14 : vector<14x128xf32>
    %cst_11 = arith.constant 0.000000e+00 : f32
    %16 = vector.broadcast %cst_11 : f32 to vector<14x128xf32>
    %17 = arith.maximumf %15, %16 : vector<14x128xf32>
    %18 = arith.truncf %17 : vector<14x128xf32> to vector<14x128xbf16>
    %c0_12 = arith.constant 0 : index
    %c2 = arith.constant 2 : index
    %c0_13 = arith.constant 0 : index
    %19 = vector.load %arg8[%c0_12, %c2, %c0_13] : memref<2x18x128xbf16, #tpu.memory_space<vmem>>, vector<1x14x128xbf16>
    %20 = vector.shape_cast %19 : vector<1x14x128xbf16> to vector<14x128xbf16>
    %21 = vector.shape_cast %18 : vector<14x128xbf16> to vector<1x14x128xbf16>
    tpu.vector_store %arg8[%c0_12, %c2, %c0_13], %21 {strides = array<i32>} : memref<2x18x128xbf16, #tpu.memory_space<vmem>>, vector<1x14x128xbf16>,
    %22 = vector.extract_strided_slice %2 {offsets = [32, 0], sizes = [16, 256], strides = [1, 1]} : vector<64x256xf32> to vector<16x256xf32>
    %23 = vector.extract_strided_slice %2 {offsets = [48, 0], sizes = [16, 256], strides = [1, 1]} : vector<64x256xf32> to vector<16x256xf32>
    %24 = arith.maximumf %22, %23 : vector<16x256xf32>
    %25 = vector.extract_strided_slice %24 {offsets = [0, 0], sizes = [16, 128], strides = [1, 1]} : vector<16x256xf32> to vector<16x128xf32>
    %26 = vector.extract_strided_slice %24 {offsets = [0, 128], sizes = [16, 128], strides = [1, 1]} : vector<16x256xf32> to vector<16x128xf32>
    %27 = arith.maximumf %25, %26 : vector<16x128xf32>
    %28 = vector.extract_strided_slice %27 {offsets = [0, 0], sizes = [14, 128], strides = [1, 1]} : vector<16x128xf32> to vector<14x128xf32>
    %29 = vector.broadcast %6 : vector<1x128xf32> to vector<14x128xf32>
    %30 = arith.addf %28, %29 : vector<14x128xf32>
    %cst_14 = arith.constant 0.000000e+00 : f32
    %31 = vector.broadcast %cst_14 : f32 to vector<14x128xf32>
    %32 = arith.maximumf %30, %31 : vector<14x128xf32>
    %33 = arith.truncf %32 : vector<14x128xf32> to vector<14x128xbf16>
    %c1 = arith.constant 1 : index
    %c2_15 = arith.constant 2 : index
    %c0_16 = arith.constant 0 : index
    %34 = vector.load %arg8[%c1, %c2_15, %c0_16] : memref<2x18x128xbf16, #tpu.memory_space<vmem>>, vector<1x14x128xbf16>
    %35 = vector.shape_cast %34 : vector<1x14x128xbf16> to vector<14x128xbf16>
    %36 = vector.shape_cast %33 : vector<14x128xbf16> to vector<1x14x128xbf16>
    tpu.vector_store %arg8[%c1, %c2_15, %c0_16], %36 {strides = array<i32>} : memref<2x18x128xbf16, #tpu.memory_space<vmem>>, vector<1x14x128xbf16>,
    %c0_17 = arith.constant 0 : index
    %c0_18 = arith.constant 0 : index
    %c0_19 = arith.constant 0 : index
    %37 = vector.load %arg8[%c0_17, %c0_18, %c0_19] : memref<2x18x128xbf16, #tpu.memory_space<vmem>>, vector<1x14x128xbf16>
    %38 = vector.shape_cast %37 : vector<1x14x128xbf16> to vector<14x128xbf16>
    %c1_20 = arith.constant 1 : index
    %c0_21 = arith.constant 0 : index
    %c0_22 = arith.constant 0 : index
    %39 = vector.load %arg8[%c1_20, %c0_21, %c0_22] : memref<2x18x128xbf16, #tpu.memory_space<vmem>>, vector<1x14x128xbf16>
    %40 = vector.shape_cast %39 : vector<1x14x128xbf16> to vector<14x128xbf16>
    %c0_23 = arith.constant 0 : index
    %c2_24 = arith.constant 2 : index
    %c0_25 = arith.constant 0 : index
    %41 = vector.load %arg8[%c0_23, %c2_24, %c0_25] : memref<2x18x128xbf16, #tpu.memory_space<vmem>>, vector<1x14x128xbf16>
    %42 = vector.shape_cast %41 : vector<1x14x128xbf16> to vector<14x128xbf16>
    %c1_26 = arith.constant 1 : index
    %c2_27 = arith.constant 2 : index
    %c0_28 = arith.constant 0 : index
    %43 = vector.load %arg8[%c1_26, %c2_27, %c0_28] : memref<2x18x128xbf16, #tpu.memory_space<vmem>>, vector<1x14x128xbf16>
    %44 = vector.shape_cast %43 : vector<1x14x128xbf16> to vector<14x128xbf16>
    %c0_29 = arith.constant 0 : index
    %c4 = arith.constant 4 : index
    %c0_30 = arith.constant 0 : index
    %45 = vector.load %arg8[%c0_29, %c4, %c0_30] : memref<2x18x128xbf16, #tpu.memory_space<vmem>>, vector<1x14x128xbf16>
    %46 = vector.shape_cast %45 : vector<1x14x128xbf16> to vector<14x128xbf16>
    %47 = tpu.concatenate %38, %40, %42, %44, %46 in 1 : vector<14x128xbf16>, vector<14x128xbf16>, vector<14x128xbf16>, vector<14x128xbf16>, vector<14x128xbf16> -> vector<14x640xbf16>
    %c0_31 = arith.constant 0 : index
    %c0_32 = arith.constant 0 : index
    %48 = vector.load %arg3[%c0_31, %c0_32] : memref<640x256xbf16, #tpu.memory_space<vmem>>, vector<640x256xbf16>
    %cst_33 = arith.constant dense<0.000000e+00> : vector<14x256xf32>
    %49 = tpu.matmul %47, %48, %cst_33 {dimension_numbers = #tpu.dot_dimension_numbers<[1], [0], [0], [1], [0, 0, 1, 1], [], []>} : vector<14x640xbf16>, vector<640x256xbf16>, vector<14x256xf32> -> vector<14x256xf32>
    %c1_34 = arith.constant 1 : index
    %c0_35 = arith.constant 0 : index
    %c0_36 = arith.constant 0 : index
    %50 = vector.load %arg8[%c1_34, %c0_35, %c0_36] : memref<2x18x128xbf16, #tpu.memory_space<vmem>>, vector<1x14x128xbf16>
    %51 = vector.shape_cast %50 : vector<1x14x128xbf16> to vector<14x128xbf16>
    %c0_37 = arith.constant 0 : index
    %c2_38 = arith.constant 2 : index
    %c0_39 = arith.constant 0 : index
    %52 = vector.load %arg8[%c0_37, %c2_38, %c0_39] : memref<2x18x128xbf16, #tpu.memory_space<vmem>>, vector<1x14x128xbf16>
    %53 = vector.shape_cast %52 : vector<1x14x128xbf16> to vector<14x128xbf16>
    %c1_40 = arith.constant 1 : index
    %c2_41 = arith.constant 2 : index
    %c0_42 = arith.constant 0 : index
    %54 = vector.load %arg8[%c1_40, %c2_41, %c0_42] : memref<2x18x128xbf16, #tpu.memory_space<vmem>>, vector<1x14x128xbf16>
    %55 = vector.shape_cast %54 : vector<1x14x128xbf16> to vector<14x128xbf16>
    %c0_43 = arith.constant 0 : index
    %c4_44 = arith.constant 4 : index
    %c0_45 = arith.constant 0 : index
    %56 = vector.load %arg8[%c0_43, %c4_44, %c0_45] : memref<2x18x128xbf16, #tpu.memory_space<vmem>>, vector<1x14x128xbf16>
    %57 = vector.shape_cast %56 : vector<1x14x128xbf16> to vector<14x128xbf16>
    %c1_46 = arith.constant 1 : index
    %c4_47 = arith.constant 4 : index
    %c0_48 = arith.constant 0 : index
    %58 = vector.load %arg8[%c1_46, %c4_47, %c0_48] : memref<2x18x128xbf16, #tpu.memory_space<vmem>>, vector<1x14x128xbf16>
    %59 = vector.shape_cast %58 : vector<1x14x128xbf16> to vector<14x128xbf16>
    %60 = tpu.concatenate %51, %53, %55, %57, %59 in 1 : vector<14x128xbf16>, vector<14x128xbf16>, vector<14x128xbf16>, vector<14x128xbf16>, vector<14x128xbf16> -> vector<14x640xbf16>
    %c0_49 = arith.constant 0 : index
    %c0_50 = arith.constant 0 : index
    %61 = vector.load %arg3[%c0_49, %c0_50] : memref<640x256xbf16, #tpu.memory_space<vmem>>, vector<640x256xbf16>
    %cst_51 = arith.constant dense<0.000000e+00> : vector<14x256xf32>
    %62 = tpu.matmul %60, %61, %cst_51 {dimension_numbers = #tpu.dot_dimension_numbers<[1], [0], [0], [1], [0, 0, 1, 1], [], []>} : vector<14x640xbf16>, vector<640x256xbf16>, vector<14x256xf32> -> vector<14x256xf32>
    %63 = arith.maximumf %49, %62 : vector<14x256xf32>
    %64 = vector.extract_strided_slice %63 {offsets = [0, 0], sizes = [14, 128], strides = [1, 1]} : vector<14x256xf32> to vector<14x128xf32>
    %65 = vector.extract_strided_slice %63 {offsets = [0, 128], sizes = [14, 128], strides = [1, 1]} : vector<14x256xf32> to vector<14x128xf32>
    %66 = arith.maximumf %64, %65 : vector<14x128xf32>
    %c0_52 = arith.constant 0 : index
    %c0_53 = arith.constant 0 : index
    %67 = vector.load %arg4[%c0_52, %c0_53] : memref<1x128xf32, #tpu.memory_space<vmem>>, vector<1x128xf32>
    %68 = vector.broadcast %67 : vector<1x128xf32> to vector<14x128xf32>
    %69 = arith.addf %66, %68 : vector<14x128xf32>
    %cst_54 = arith.constant 0.000000e+00 : f32
    %70 = vector.broadcast %cst_54 : f32 to vector<14x128xf32>
    %71 = arith.maximumf %69, %70 : vector<14x128xf32>
    %c0_55 = arith.constant 0 : index
    %c0_56 = arith.constant 0 : index
    %72 = vector.load %arg9[%c0_55, %c0_56] : memref<14x128xf32, #tpu.memory_space<vmem>>, vector<14x128xf32>
    tpu.vector_store %arg9[%c0_55, %c0_56], %71 {strides = array<i32>} : memref<14x128xf32, #tpu.memory_space<vmem>>, vector<14x128xf32>,
    %c0_57 = arith.constant 0 : index
    %c0_58 = arith.constant 0 : index
    %73 = vector.load %arg9[%c0_57, %c0_58] : memref<14x128xf32, #tpu.memory_space<vmem>>, vector<2x128xf32>
    %c0_59 = arith.constant 0 : index
    %c0_60 = arith.constant 0 : index
    %74 = vector.load %arg10[%c0_59, %c0_60] : memref<2x896xf32, #tpu.memory_space<vmem>>, vector<2x128xf32>
    tpu.vector_store %arg10[%c0_59, %c0_60], %73 {strides = array<i32>} : memref<2x896xf32, #tpu.memory_space<vmem>>, vector<2x128xf32>,
    %c2_61 = arith.constant 2 : index
    %c0_62 = arith.constant 0 : index
    %75 = vector.load %arg9[%c2_61, %c0_62] : memref<14x128xf32, #tpu.memory_space<vmem>>, vector<2x128xf32>
    %c0_63 = arith.constant 0 : index
    %c128 = arith.constant 128 : index
    %76 = vector.load %arg10[%c0_63, %c128] : memref<2x896xf32, #tpu.memory_space<vmem>>, vector<2x128xf32>
    tpu.vector_store %arg10[%c0_63, %c128], %75 {strides = array<i32>} : memref<2x896xf32, #tpu.memory_space<vmem>>, vector<2x128xf32>,
    %c4_64 = arith.constant 4 : index
    %c0_65 = arith.constant 0 : index
    %77 = vector.load %arg9[%c4_64, %c0_65] : memref<14x128xf32, #tpu.memory_space<vmem>>, vector<2x128xf32>
    %c0_66 = arith.constant 0 : index
    %c256 = arith.constant 256 : index
    %78 = vector.load %arg10[%c0_66, %c256] : memref<2x896xf32, #tpu.memory_space<vmem>>, vector<2x128xf32>
    tpu.vector_store %arg10[%c0_66, %c256], %77 {strides = array<i32>} : memref<2x896xf32, #tpu.memory_space<vmem>>, vector<2x128xf32>,
    %c6 = arith.constant 6 : index
    %c0_67 = arith.constant 0 : index
    %79 = vector.load %arg9[%c6, %c0_67] : memref<14x128xf32, #tpu.memory_space<vmem>>, vector<2x128xf32>
    %c0_68 = arith.constant 0 : index
    %c384 = arith.constant 384 : index
    %80 = vector.load %arg10[%c0_68, %c384] : memref<2x896xf32, #tpu.memory_space<vmem>>, vector<2x128xf32>
    tpu.vector_store %arg10[%c0_68, %c384], %79 {strides = array<i32>} : memref<2x896xf32, #tpu.memory_space<vmem>>, vector<2x128xf32>,
    %c8 = arith.constant 8 : index
    %c0_69 = arith.constant 0 : index
    %81 = vector.load %arg9[%c8, %c0_69] : memref<14x128xf32, #tpu.memory_space<vmem>>, vector<2x128xf32>
    %c0_70 = arith.constant 0 : index
    %c512 = arith.constant 512 : index
    %82 = vector.load %arg10[%c0_70, %c512] : memref<2x896xf32, #tpu.memory_space<vmem>>, vector<2x128xf32>
    tpu.vector_store %arg10[%c0_70, %c512], %81 {strides = array<i32>} : memref<2x896xf32, #tpu.memory_space<vmem>>, vector<2x128xf32>,
    %c10 = arith.constant 10 : index
    %c0_71 = arith.constant 0 : index
    %83 = vector.load %arg9[%c10, %c0_71] : memref<14x128xf32, #tpu.memory_space<vmem>>, vector<2x128xf32>
    %c0_72 = arith.constant 0 : index
    %c640 = arith.constant 640 : index
    %84 = vector.load %arg10[%c0_72, %c640] : memref<2x896xf32, #tpu.memory_space<vmem>>, vector<2x128xf32>
    tpu.vector_store %arg10[%c0_72, %c640], %83 {strides = array<i32>} : memref<2x896xf32, #tpu.memory_space<vmem>>, vector<2x128xf32>,
    %c12 = arith.constant 12 : index
    %c0_73 = arith.constant 0 : index
    %85 = vector.load %arg9[%c12, %c0_73] : memref<14x128xf32, #tpu.memory_space<vmem>>, vector<2x128xf32>
    %c0_74 = arith.constant 0 : index
    %c768 = arith.constant 768 : index
    %86 = vector.load %arg10[%c0_74, %c768] : memref<2x896xf32, #tpu.memory_space<vmem>>, vector<2x128xf32>
    tpu.vector_store %arg10[%c0_74, %c768], %85 {strides = array<i32>} : memref<2x896xf32, #tpu.memory_space<vmem>>, vector<2x128xf32>,
    %c0_75 = arith.constant 0 : index
    %c0_76 = arith.constant 0 : index
    %87 = vector.load %arg10[%c0_75, %c0_76] : memref<2x896xf32, #tpu.memory_space<vmem>>, vector<2x896xf32>
    %c0_77 = arith.constant 0 : index
    %c0_78 = arith.constant 0 : index
    %88 = vector.load %arg5[%c0_77, %c0_78] : memref<896x10xf32, #tpu.memory_space<vmem>>, vector<896x10xf32>
    %cst_79 = arith.constant dense<0.000000e+00> : vector<2x10xf32>
    %89 = tpu.matmul %87, %88, %cst_79 {dimension_numbers = #tpu.dot_dimension_numbers<[1], [0], [0], [1], [0, 0, 1, 1], [], []>} : vector<2x896xf32>, vector<896x10xf32>, vector<2x10xf32> -> vector<2x10xf32>
    %c0_80 = arith.constant 0 : index
    %c0_81 = arith.constant 0 : index
    %90 = vector.load %arg6[%c0_80, %c0_81] : memref<1x10xf32, #tpu.memory_space<vmem>>, vector<1x10xf32>
    %91 = vector.broadcast %90 : vector<1x10xf32> to vector<2x10xf32>
    %92 = arith.addf %89, %91 : vector<2x10xf32>
    %c0_82 = arith.constant 0 : index
    %c0_83 = arith.constant 0 : index
    %93 = vector.load %arg7[%c0_82, %c0_83] : memref<2x10xf32, #tpu.memory_space<vmem>>, vector<2x10xf32>
    tpu.vector_store %arg7[%c0_82, %c0_83], %92 {strides = array<i32>} : memref<2x10xf32, #tpu.memory_space<vmem>>, vector<2x10xf32>,
    return
  }
}

</mosaic_0001>

<bundles_post_ra>
// kernel: cnn_deep_forward.1
= control target key start
LH: loop header
LB: loop body
LE: loop exit
PB: predicated region body
PF: predicated region fallthrough
CT: control target
= control target key end

     0   :  { %vm178_vm0 = vcmask 97280   ;;  %vm191_vm1 = vcmask 1045504   ;;  %s3022_s0 = inlined_call_operand.vmem [shape: bf16[64,140], index: 0, kind: input, shape index: {}]   ;;  %s3023_s1 = inlined_call_operand.vmem [shape: bf16[140,256], index: 1, kind: input, shape index: {}]   ;;  %s3024_s2 = inlined_call_operand.vmem [shape: f32[1,128], index: 2, kind: input, shape index: {}]   ;;  %s3025_s3 = inlined_call_operand.vmem [shape: bf16[640,256], index: 3, kind: input, shape index: {}]   ;;  %s3026_s4 = inlined_call_operand.vmem [shape: f32[1,128], index: 4, kind: input, shape index: {}]   ;;  %s3027_s5 = inlined_call_operand.vmem [shape: f32[896,10], index: 5, kind: input, shape index: {}]   ;;  %s3028_s6 = inlined_call_operand.vmem [shape: f32[1,10], index: 6, kind: input, shape index: {}]   ;;  %s3029_s7 = inlined_call_operand.hbm [shape: f32[2,10], index: 7, kind: output, shape index: {}]  }
   0x1   :  { %v2055_v0 = vld [vmem:[%s3023_s1 + $0x4] ss:$8 sps:$4 sm:$0xff]   ;;  %v2057_v1 = vld [vmem:[%s3023_s1] ss:$8 sps:$4 sm:$0xff]   ;;  %v2058_v2 = vld [vmem:[%s3023_s1 + $0x14] ss:$8 sps:$4 sm:$0xff]  }
   0x2   :  { %198 = vmatprep.subr.bf16.mxu0 %v2055_v0  ;;  %v2060_v3 = vld [vmem:[%s3023_s1 + $0x10] ss:$8 sps:$4 sm:$0xff]   ;;  %v2061_v4 = vld [vmem:[%s3023_s1 + $0x24] ss:$8 sps:$4 sm:$0xff]   ;;  %v2063_v5 = vld [vmem:[%s3023_s1 + $0x20] ss:$8 sps:$4 sm:$0xff]  }
   0x3   :  { %199 = vmatpush1.bf16.msra.mxu0 %v2057_v1  ;;  %v2064_v6 = vld [vmem:[%s3023_s1 + $0x34] ss:$8 sps:$4 sm:$0xff]   ;;  %v2066_v7 = vld [vmem:[%s3023_s1 + $0x30] ss:$8 sps:$4 sm:$0xff]   ;;  %v2067_v8 = vld [vmem:[%s3023_s1 + $0x44] ss:$8 sps:$4 sm:$0xff]  }
   0x4   :  { %200 = vmatprep.subr.bf16.mxu0 %v2058_v2  ;;  %v2084_v9 = vld [vmem:[%s3022_s0 + $0x4] ss:$8 sps:$4 sm:$0xff]   ;;  %v2069_v10 = vld [vmem:[%s3023_s1 + $0x40] ss:$8 sps:$4 sm:$0xff]   ;;  %v2070_v11 = vld [vmem:[%s3023_s1 + $0x54] ss:$8 sps:$4 sm:$0xff]  }
   0x5   :  { %1653 = vmatprep.mubr.msk.bf16.mxu0 %vm178_vm0, %v2084_v9  ;;  %v2094_v12 = vld [vmem:[%s3025_s3] ss:$8 sps:$4 sm:$0xff]   ;;  %v2096_v13 = vld [vmem:[%s3025_s3 + $0x4] ss:$8 sps:$4 sm:$0xff]   ;;  %v2072_v14 = vld [vmem:[%s3023_s1 + $0x50] ss:$8 sps:$4 sm:$0xff]  }
   0x6   :  { %v2099_v15 = vld [vmem:[%s3025_s3 + $0x14] ss:$8 sps:$4 sm:$0xff]   ;;  %v2073_v16 = vld [vmem:[%s3023_s1 + $0x64] ss:$8 sps:$4 sm:$0xff]   ;;  %861 = vmatprep.subr.bf16.mxu1 %v2096_v13  ;;  %v2075_v17 = vld [vmem:[%s3023_s1 + $0x60] ss:$8 sps:$4 sm:$0xff]  }
   0x7   :  { %201 = vmatpush1.bf16.msra.mxu0 %v2060_v3  ;;  %862 = vmatpush1.bf16.msra.mxu1 %v2094_v12  ;;  %v2097_v18 = vld [vmem:[%s3025_s3 + $0x10] ss:$8 sps:$4 sm:$0xff]   ;;  %v2076_v19 = vld [vmem:[%s3023_s1 + $0x74] ss:$8 sps:$4 sm:$0xff]   ;;  %v2102_v20 = vld [vmem:[%s3025_s3 + $0x24] ss:$8 sps:$4 sm:$0xff]  }
   0x8   :  { %202 = vmatprep.subr.bf16.mxu0 %v2061_v4  ;;  %863 = vmatprep.subr.bf16.mxu1 %v2099_v15  ;;  %v2100_v21 = vld [vmem:[%s3025_s3 + $0x20] ss:$8 sps:$4 sm:$0xff]   ;;  %v2105_v22 = vld [vmem:[%s3025_s3 + $0x34] ss:$8 sps:$4 sm:$0xff]   ;;  %v2078_v23 = vld [vmem:[%s3023_s1 + $0x70] ss:$8 sps:$4 sm:$0xff]  }
   0x9   :  { %v2079_v24 = vld [vmem:[%s3023_s1 + $0x84] ss:$8 sps:$4 sm:$0x3f]   ;;  %v2081_v25 = vld [vmem:[%s3023_s1 + $0x80] ss:$8 sps:$4 sm:$0x3f]  }
   0xa   :  { %v2103_v26 = vld [vmem:[%s3025_s3 + $0x30] ss:$8 sps:$4 sm:$0xff]   ;;  %v193_v27 = vsel %vm191_vm1, %v2081_v25, 0  ;;  %v2082_v28 = vld [vmem:[%s3022_s0] ss:$8 sps:$4 sm:$0xff]  }
   0xb   :  { %203 = vmatpush1.bf16.msra.mxu0 %v2063_v5  ;;  %864 = vmatpush1.bf16.msra.mxu1 %v2097_v18  ;;  %v2085_v29 = vld [vmem:[%s3022_s0 + $0x14] ss:$8 sps:$4 sm:$0xff]   ;;  %v2087_v30 = vld [vmem:[%s3022_s0 + $0x10] ss:$8 sps:$4 sm:$0xff]   ;;  %v2088_v31 = vld [vmem:[%s3022_s0 + $0x24] ss:$8 sps:$4 sm:$0xff]  }
   0xc   :  { %204 = vmatprep.subr.bf16.mxu0 %v2064_v6  ;;  %865 = vmatprep.subr.bf16.mxu1 %v2102_v20 }
   0xf   :  { %205 = vmatpush1.bf16.msra.mxu0 %v2066_v7  ;;  %866 = vmatpush1.bf16.msra.mxu1 %v2100_v21 }
  0x10   :  { %206 = vmatprep.subr.bf16.mxu0 %v2067_v8  ;;  %867 = vmatprep.subr.bf16.mxu1 %v2105_v22 }
  0x13   :  { %207 = vmatpush1.bf16.msra.mxu0 %v2069_v10  ;;  %868 = vmatpush1.bf16.msra.mxu1 %v2103_v26 }
  0x14   :  { %208 = vmatprep.subr.bf16.mxu0 %v2070_v11 }
  0x17   :  { %209 = vmatpush1.bf16.msra.mxu0 %v2072_v14 }
  0x18   :  { %210 = vmatprep.subr.bf16.mxu0 %v2073_v16 }
  0x1b   :  { %211 = vmatpush1.bf16.msra.mxu0 %v2075_v17 }
  0x1c   :  { %212 = vmatprep.subr.bf16.mxu0 %v2076_v19 }
  0x1f   :  { %213 = vmatpush1.bf16.msra.mxu0 %v2078_v23 }
  0x20   :  { %1652 = vmatprep.subr.msk.bf16.mxu0 %vm191_vm1, %v2079_v24 }
  0x23   :  { %215 = vmatpush1.bf16.msra.mxu0 %v193_v27 }
  0x24   :  { %1005 = vmatprep.subr.bf16.mxu0 %v2096_v13 }
  0x26   :  { %231 = vmatmul.mubr.bf16.vlgmr.msra.gmra.mrb[0].mxu0 %v2082_v28 }
  0x27   :  { %1654 = vmatprep.mubr.msk.bf16.mxu0 %vm178_vm0, %v2085_v29  ;;  %1006 = vmatpush1.bf16.msra.mxu0 %v2094_v12 }
  0x28   :  { %1007 = vmatprep.subr.bf16.mxu0 %v2099_v15 }
  0x2b   :  { %1008 = vmatpush1.bf16.msra.mxu0 %v2097_v18 }
  0x2c   :  { %1009 = vmatprep.subr.bf16.mxu0 %v2102_v20 }
  0x2e   :  { %241 = vmatmul.mubr.bf16.gmra.mrb[4].mxu0 %v2087_v30 }
  0x2f   :  { %12 = vsyncpa [#allocation6], 0  ;;  %1655 = vmatprep.mubr.msk.bf16.mxu0 %vm178_vm0, %v2088_v31  ;;  %1010 = vmatpush1.bf16.msra.mxu0 %v2100_v21  ;;  %v2090_v32 = vld [vmem:[%s3022_s0 + $0x20] ss:$8 sps:$4 sm:$0xff]   ;;  %v2091_v33 = vld [vmem:[%s3022_s0 + $0x34] ss:$8 sps:$4 sm:$0xff]  }
  0x30   :  { %1011 = vmatprep.subr.bf16.mxu0 %v2105_v22  ;;  %v2093_v34 = vld [vmem:[%s3022_s0 + $0x30] ss:$8 sps:$4 sm:$0xff]   ;;  %v2108_v35 = vld [vmem:[%s3025_s3 + $0x44] ss:$8 sps:$4 sm:$0xff]   ;;  %v2106_v36 = vld [vmem:[%s3025_s3 + $0x40] ss:$8 sps:$4 sm:$0xff]  }
  0x31   :  { %869 = vmatprep.subr.bf16.mxu1 %v2108_v35  ;;  %v2109_v37 = vld [vmem:[%s3025_s3 + $0x50] ss:$8 sps:$4 sm:$0xff]   ;;  %v2111_v38 = vld [vmem:[%s3025_s3 + $0x54] ss:$8 sps:$4 sm:$0xff]   ;;  %v2114_v39 = vld [vmem:[%s3025_s3 + $0x64] ss:$8 sps:$4 sm:$0xff]  }
  0x32   :  { %870 = vmatpush1.bf16.msra.mxu1 %v2106_v36  ;;  %v2112_v40 = vld [vmem:[%s3025_s3 + $0x60] ss:$8 sps:$4 sm:$0xff]   ;;  %v2117_v41 = vld [vmem:[%s3025_s3 + $0x74] ss:$8 sps:$4 sm:$0xff]   ;;  %v2115_v42 = vld [vmem:[%s3025_s3 + $0x70] ss:$8 sps:$4 sm:$0xff]  }
  0x33   :  { %1012 = vmatpush1.bf16.msra.mxu0 %v2103_v26  ;;  %871 = vmatprep.subr.bf16.mxu1 %v2111_v38  ;;  %v2120_v43 = vld [vmem:[%s3025_s3 + $0x84] ss:$8 sps:$4 sm:$0xff]   ;;  %v2118_v44 = vld [vmem:[%s3025_s3 + $0x80] ss:$8 sps:$4 sm:$0xff]   ;;  %v2123_v45 = vld [vmem:[%s3025_s3 + $0x94] ss:$8 sps:$4 sm:$0xff]  }
  0x34   :  { %1013 = vmatprep.subr.bf16.mxu0 %v2108_v35  ;;  %v2121_v46 = vld [vmem:[%s3025_s3 + $0x90] ss:$8 sps:$4 sm:$0xff]   ;;  %v2248_v47 = vmov 0   ;;  %v2126_v48 = vld [vmem:[%s3025_s3 + $0xa4] ss:$8 sps:$4 sm:$0xff]   ;;  %vm298_vm2 = vcmask 1040384  }
  0x35   :  { %272 = vst [vmem:[#allocation2 + $0xc] sm:$0x1] %v2248_v47  ;;  %271 = vst [vmem:[#allocation2] sm:$0x1] %v2248_v47  ;;  %v2124_v49 = vld [vmem:[%s3025_s3 + $0xa0] ss:$8 sps:$4 sm:$0xff]  }
  0x36   :  { %251 = vmatmul.mubr.bf16.gmra.mrb[8].mxu0 %v2090_v32  ;;  %872 = vmatpush1.bf16.msra.mxu1 %v2109_v37  ;;  %273 = vst [vmem:[#allocation2 + $0x8] sm:$0x1] %v2248_v47  ;;  %274 = vst [vmem:[#allocation2 + $0x14] sm:$0x1] %v2248_v47  ;;  %v2129_v50 = vld [vmem:[%s3025_s3 + $0xb4] ss:$8 sps:$4 sm:$0xff]  }
  0x37   :  { %1656 = vmatprep.mubr.msk.bf16.mxu0 %vm178_vm0, %v2091_v33  ;;  %1014 = vmatpush1.bf16.msra.mxu0 %v2106_v36  ;;  %v2127_v51 = vld [vmem:[%s3025_s3 + $0xb0] ss:$8 sps:$4 sm:$0xff]   ;;  %v2132_v52 = vld [vmem:[%s3025_s3 + $0xc4] ss:$8 sps:$4 sm:$0xff]   ;;  %v2130_v53 = vld [vmem:[%s3025_s3 + $0xc0] ss:$8 sps:$4 sm:$0xff]  }
  0x38   :  { %1015 = vmatprep.subr.bf16.mxu0 %v2111_v38  ;;  %873 = vmatprep.subr.bf16.mxu1 %v2114_v39  ;;  %v2137_v54 = vld [vmem:[%s3025_s3 + $0xd4] ss:$8 sps:$4 sm:$0xff]   ;;  %v2135_v55 = vld [vmem:[%s3025_s3 + $0xd0] ss:$8 sps:$4 sm:$0xff]   ;;  %v2140_v56 = vld [vmem:[%s3025_s3 + $0xe4] ss:$8 sps:$4 sm:$0xff]  }
  0x39   :  { %v2138_v57 = vld [vmem:[%s3025_s3 + $0xe0] ss:$8 sps:$4 sm:$0xff]   ;;  %v2143_v58 = vld [vmem:[%s3025_s3 + $0xf4] ss:$8 sps:$4 sm:$0xff]   ;;  %v2141_v59 = vld [vmem:[%s3025_s3 + $0xf0] ss:$8 sps:$4 sm:$0xff]  }
  0x3a   :  { %874 = vmatpush1.bf16.msra.mxu1 %v2112_v40  ;;  %v2146_v60 = vld [vmem:[%s3025_s3 + $0x104] ss:$8 sps:$4 sm:$0xff]   ;;  %v1657_v6 = vld [vmem:[%s3024_s2] ss:$0 sm:$0xff]  ;;  %vm299_vm3 = vcmask 1044484   ;;  %vm2251_vm5 = vmmov 0  }
  0x3b   :  { %1016 = vmatpush1.bf16.msra.mxu0 %v2109_v37  ;;  %875 = vmatprep.subr.bf16.mxu1 %v2117_v41  ;;  %vm2484_vm4 = vmor %vm298_vm2, %vm299_vm3  ;;  %v2189_v23 = vld [vmem:[%s3025_s3 + $0x1d4] ss:$8 sps:$4 sm:$0xff]   ;;  %vm1610_vm6 = vcmask 74752  }
  0x3c   :  { %1017 = vmatprep.subr.bf16.mxu0 %v2114_v39 }
  0x3e   :  { %261 = vmatmul.mubr.bf16.gmra.mrb[12].mxu0 %v2093_v34  ;;  %876 = vmatpush1.bf16.msra.mxu1 %v2115_v42 }
  0x3f   :  { %1018 = vmatpush1.bf16.msra.mxu0 %v2112_v40  ;;  %877 = vmatprep.subr.bf16.mxu1 %v2120_v43 }
  0x40   :  { %1019 = vmatprep.subr.bf16.mxu0 %v2117_v41 }
  0x42   :  { %878 = vmatpush1.bf16.msra.mxu1 %v2118_v44 }
  0x43   :  { %1020 = vmatpush1.bf16.msra.mxu0 %v2115_v42  ;;  %879 = vmatprep.subr.bf16.mxu1 %v2123_v45 }
  0x44   :  { %1021 = vmatprep.subr.bf16.mxu0 %v2120_v43 }
  0x46   :  { %880 = vmatpush1.bf16.msra.mxu1 %v2121_v46 }
  0x47   :  { %1022 = vmatpush1.bf16.msra.mxu0 %v2118_v44  ;;  %881 = vmatprep.subr.bf16.mxu1 %v2126_v48 }
  0x48   :  { %1023 = vmatprep.subr.bf16.mxu0 %v2123_v45 }
  0x4a   :  { %882 = vmatpush1.bf16.msra.mxu1 %v2124_v49 }
  0x4b   :  { %1024 = vmatpush1.bf16.msra.mxu0 %v2121_v46  ;;  %883 = vmatprep.subr.bf16.mxu1 %v2129_v50 }
  0x4c   :  { %1025 = vmatprep.subr.bf16.mxu0 %v2126_v48 }
  0x4e   :  { %884 = vmatpush1.bf16.msra.mxu1 %v2127_v51 }
  0x4f   :  { %1026 = vmatpush1.bf16.msra.mxu0 %v2124_v49  ;;  %885 = vmatprep.subr.bf16.mxu1 %v2132_v52 }
  0x50   :  { %1027 = vmatprep.subr.bf16.mxu0 %v2129_v50 }
  0x52   :  { %886 = vmatpush1.bf16.msra.mxu1 %v2130_v53 }
  0x53   :  { %1028 = vmatpush1.bf16.msra.mxu0 %v2127_v51  ;;  %887 = vmatprep.subr.bf16.mxu1 %v2137_v54 }
  0x54   :  { %1029 = vmatprep.subr.bf16.mxu0 %v2132_v52 }
  0x56   :  { %888 = vmatpush1.bf16.msra.mxu1 %v2135_v55 }
  0x57   :  { %1030 = vmatpush1.bf16.msra.mxu0 %v2130_v53  ;;  %889 = vmatprep.subr.bf16.mxu1 %v2140_v56 }
  0x58   :  { %1031 = vmatprep.subr.bf16.mxu0 %v2137_v54  ;;  %v2149_v54 = vld [vmem:[#allocation2 + $0x8] ss:$0 sps:$4 sm:$0x11]  }
  0x5a   :  { %890 = vmatpush1.bf16.msra.mxu1 %v2138_v57 }
  0x5b   :  { %1032 = vmatpush1.bf16.msra.mxu0 %v2135_v55  ;;  %891 = vmatprep.subr.bf16.mxu1 %v2143_v58  ;;  %v2144_v55 = vld [vmem:[%s3025_s3 + $0x100] ss:$8 sps:$4 sm:$0xff]  }
  0x5c   :  { %1033 = vmatprep.subr.bf16.mxu0 %v2140_v56 }
  0x5e   :  { %892 = vmatpush1.bf16.msra.mxu1 %v2141_v59 }
  0x5f   :  { %1034 = vmatpush1.bf16.msra.mxu0 %v2138_v57  ;;  %904 = vmatprep.subr.bf16.mxu1 %v2146_v60  ;;  %v378_v57 = vrot.slane %v2149_v54, 2  ;;  %v1170_v54 = vld [vmem:[%s3027_s5 + $0x8] sm:$0xff] }
  0x60   :  { %1035 = vmatprep.subr.bf16.mxu0 %v2143_v58  ;;  %v2153_v58 = vld [vmem:[%s3025_s3 + $0x114] ss:$8 sps:$4 sm:$0xff]  }
  0x63   :  { %1036 = vmatpush1.bf16.msra.mxu0 %v2141_v59 }
  0x64   :  { %1048 = vmatprep.subr.bf16.mxu0 %v2146_v60 }
  0xf9   :  { %v232_v61 = vpop.f32.mrb[0].mxu0 }
  0xfa   :  { %v234_v62 = vpop.f32.mrb[1].mxu0 }
  0xfb   :  { %v236_v63 = vpop.f32.mrb[2].mxu0 }
  0xfc   :  { %v238_v0 = vpop.f32.mrb[3].mxu0 }
 0x101   :  { %v242_v1 = vpop.f32.mrb[4].mxu0 }
 0x102   :  { %v276_v2 = vmax.f32 %v232_v61, %v242_v1  ;;  %v244_v3 = vpop.f32.mrb[5].mxu0  ;;  %v2156_v1 = vld [vmem:[%s3025_s3 + $0x124] ss:$8 sps:$4 sm:$0xff]  }
 0x103   :  { %v277_v4 = vmax.f32 %v234_v62, %v244_v3  ;;  %v246_v5 = vpop.f32.mrb[6].mxu0  ;;  %v2159_v3 = vld [vmem:[%s3025_s3 + $0x134] ss:$8 sps:$4 sm:$0xff]  }
 0x104   :  { %v278_v7 = vmax.f32 %v236_v63, %v246_v5  ;;  %v248_v8 = vpop.f32.mrb[7].mxu0  ;;  %v2162_v5 = vld [vmem:[%s3025_s3 + $0x144] ss:$8 sps:$4 sm:$0xff]  }
 0x105   :  { %v280_v9 = vmax.f32 %v276_v2, %v277_v4  ;;  %v279_v10 = vmax.f32 %v238_v0, %v248_v8  ;;  %v2151_v0 = vld [vmem:[%s3025_s3 + $0x110] ss:$8 sps:$4 sm:$0xff]   ;;  %v2154_v2 = vld [vmem:[%s3025_s3 + $0x120] ss:$8 sps:$4 sm:$0xff]  }
 0x106   :  { %v2157_v4 = vld [vmem:[%s3025_s3 + $0x130] ss:$8 sps:$4 sm:$0xff]  }
 0x107   :  { %v288_v11 = vadd.f32 %v1657_v6, %v280_v9  ;;  %v281_v12 = vmax.f32 %v278_v7, %v279_v10  ;;  %v2165_v7 = vld [vmem:[%s3025_s3 + $0x154] ss:$8 sps:$4 sm:$0xff]   ;;  %v2163_v8 = vld [vmem:[%s3025_s3 + $0x150] ss:$8 sps:$4 sm:$0xff]   ;;  %v2168_v9 = vld [vmem:[%s3025_s3 + $0x164] ss:$8 sps:$4 sm:$0xff]  }
 0x108   :  { %v2166_v10 = vld [vmem:[%s3025_s3 + $0x160] ss:$8 sps:$4 sm:$0xff]  }
 0x109   :  { %v290_v13 = vmax.f32 %v288_v11, 0.0  ;;  %v289_v14 = vadd.f32 %v1657_v6, %v281_v12  ;;  %v252_v15 = vpop.f32.mrb[8].mxu0  ;;  %v2171_v11 = vld [vmem:[%s3025_s3 + $0x174] ss:$8 sps:$4 sm:$0xff]   ;;  %v2169_v12 = vld [vmem:[%s3025_s3 + $0x170] ss:$8 sps:$4 sm:$0xff]  }
 0x10a   :  { %v254_v16 = vpop.f32.mrb[9].mxu0 }
 0x10b   :  { %v1752_v17 = vpack.c.bf16 %v290_v13, %v290_v13  ;;  %v291_v18 = vmax.f32 %v289_v14, 0.0  ;;  %v256_v19 = vpop.f32.mrb[10].mxu0  ;;  %v2174_v13 = vld [vmem:[%s3025_s3 + $0x184] ss:$8 sps:$4 sm:$0xff]   ;;  %v2172_v14 = vld [vmem:[%s3025_s3 + $0x180] ss:$8 sps:$4 sm:$0xff]  }
 0x10c   :  { %v258_v20 = vpop.f32.mrb[11].mxu0 }
 0x10d   :  { %v301_v21 = vrot.slane %v1752_v17, 7  ;;  %v1753_v22 = vpack.c.bf16 %v291_v18, %v291_v18  ;;  %v2180_v17 = vld [vmem:[%s3025_s3 + $0x1a4] ss:$8 sps:$4 sm:$0xff]   ;;  %v2178_v18 = vld [vmem:[%s3025_s3 + $0x1a0] ss:$8 sps:$4 sm:$0xff]  }
 0x10f   :  { %v302_v24 = vrot.slane %v301_v21, 4  ;;  %307 = vst [vmem:[#allocation2] sm:$0xe] %v301_v21  ;;  %v303_v25 = vrot.slane %v1753_v22, 7  ;;  %v2186_v21 = vld [vmem:[%s3025_s3 + $0x1c4] ss:$8 sps:$4 sm:$0xff]  }
 0x110   :  { %v2184_v22 = vld [vmem:[%s3025_s3 + $0x1c0] ss:$8 sps:$4 sm:$0xff]  }
 0x111   :  { %v304_v26 = vsel %vm2484_vm4, %v302_v24, %v303_v25  ;;  %v262_v27 = vpop.f32.mrb[12].mxu0  ;;  %v2187_v24 = vld [vmem:[%s3025_s3 + $0x1d0] ss:$8 sps:$4 sm:$0xff]   ;;  %v2192_v25 = vld [vmem:[%s3025_s3 + $0x1e4] ss:$8 sps:$4 sm:$0xff]  }
 0x112   :  { %308 = vst [vmem:[#allocation2 + $0x4] sm:$0xf] %v304_v26  ;;  %v309_v28 = vmax.f32 %v252_v15, %v262_v27  ;;  %v264_v29 = vpop.f32.mrb[13].mxu0  ;;  %v2177_v15 = vld [vmem:[%s3025_s3 + $0x194] ss:$8 sps:$4 sm:$0xff]  }
 0x113   :  { %v310_v30 = vmax.f32 %v254_v16, %v264_v29  ;;  %v266_v31 = vpop.f32.mrb[14].mxu0  ;;  %v2175_v16 = vld [vmem:[%s3025_s3 + $0x190] ss:$8 sps:$4 sm:$0xff]   ;;  %v2190_v26 = vld [vmem:[%s3025_s3 + $0x1e0] ss:$8 sps:$4 sm:$0xff]  }
 0x114   :  { %v311_v32 = vmax.f32 %v256_v19, %v266_v31  ;;  %v268_v33 = vpop.f32.mrb[15].mxu0  ;;  %v2183_v19 = vld [vmem:[%s3025_s3 + $0x1b4] ss:$8 sps:$4 sm:$0xff]   ;;  %v2198_v29 = vld [vmem:[%s3025_s3 + $0x204] ss:$8 sps:$4 sm:$0xff]  }
 0x115   :  { %v313_v34 = vmax.f32 %v309_v28, %v310_v30  ;;  %v312_v35 = vmax.f32 %v258_v20, %v268_v33  ;;  %v2181_v20 = vld [vmem:[%s3025_s3 + $0x1b0] ss:$8 sps:$4 sm:$0xff]   ;;  %v2195_v27 = vld [vmem:[%s3025_s3 + $0x1f4] ss:$8 sps:$4 sm:$0xff]   ;;  %v2196_v30 = vld [vmem:[%s3025_s3 + $0x200] ss:$8 sps:$4 sm:$0xff]  }
 0x116   :  { %v338_v38 = vld [vmem:[#allocation2] sm:$0xe]  ;;  %v2193_v28 = vld [vmem:[%s3025_s3 + $0x1f0] ss:$8 sps:$4 sm:$0xff]   ;;  %v2201_v31 = vld [vmem:[%s3025_s3 + $0x214] ss:$8 sps:$4 sm:$0xff]  }
 0x117   :  { %v315_v36 = vadd.f32 %v1657_v6, %v313_v34  ;;  %v314_v37 = vmax.f32 %v311_v32, %v312_v35  ;;  %v342_v52 = vld [vmem:[#allocation2] sm:$0xc]  ;;  %v2199_v32 = vld [vmem:[%s3025_s3 + $0x210] ss:$8 sps:$4 sm:$0xff]   ;;  %v2204_v33 = vld [vmem:[%s3025_s3 + $0x224] ss:$8 sps:$4 sm:$0xff]  }
 0x118   :  { %v2202_v34 = vld [vmem:[%s3025_s3 + $0x220] ss:$8 sps:$4 sm:$0xff]   ;;  %v2207_v35 = vld [vmem:[%s3025_s3 + $0x234] ss:$8 sps:$4 sm:$0xff]  }
 0x119   :  { %v317_v39 = vmax.f32 %v315_v36, 0.0  ;;  %v316_v40 = vadd.f32 %v1657_v6, %v314_v37  ;;  %v339_v41 = vld [vmem:[#allocation2 + $0x4] sm:$0xf]  ;;  %v2160_v6 = vld [vmem:[%s3025_s3 + $0x140] ss:$8 sps:$4 sm:$0xff]  }
 0x11a   :  { %v1664_v42 = vcombine.low %v338_v38, %v339_v41  ;;  %v1666_v53 = vcombine.low %v342_v52, %v339_v41  ;;  %v2148_v60 = vld [vmem:[#allocation2] sm:$0x7f]   ;;  %v2205_v36 = vld [vmem:[%s3025_s3 + $0x230] ss:$8 sps:$4 sm:$0xff]   ;;  %v2213_v38 = vld [vmem:[%s3025_s3 + $0x254] ss:$8 sps:$4 sm:$0xff]  }
 0x11b   :  { %v1754_v43 = vpack.c.bf16 %v317_v39, %v317_v39  ;;  %v318_v44 = vmax.f32 %v316_v40, 0.0  ;;  %v2208_v37 = vld [vmem:[%s3025_s3 + $0x240] ss:$8 sps:$4 sm:$0xff]   ;;  %v2211_v39 = vld [vmem:[%s3025_s3 + $0x250] ss:$8 sps:$4 sm:$0xff]  }
 0x11c   :  { %v2490_v45 = vrot.slane %v1664_v42, 1  ;;  %v377_v56 = vrot.slane %v1666_v53, 2  ;;  %v2216_v40 = vld [vmem:[%s3025_s3 + $0x264] ss:$8 sps:$4 sm:$0xff]   ;;  %v2214_v41 = vld [vmem:[%s3025_s3 + $0x260] ss:$8 sps:$4 sm:$0xff]  }
 0x11d   :  { %v325_v46 = vrot.slane %v1754_v43, 7  ;;  %v1755_v48 = vpack.c.bf16 %v318_v44, %v318_v44  ;;  %v2219_v42 = vld [vmem:[%s3025_s3 + $0x274] ss:$8 sps:$4 sm:$0xff]   ;;  %v1169_v53 = vld [vmem:[%s3027_s5] sm:$0xff] }
 0x11e   :  { %1037 = vmatprep.mubr.bf16.mxu0 %v2490_v45  ;;  %v2504_v62 = vsel %vm191_vm1, %v377_v56, %v378_v57  ;;  %v2221_v44 = vld [vmem:[#allocation2 + $0x14] ss:$0 sps:$4 sm:$0x11]   ;;  %v1249_v56 = vld [vmem:[%s3027_s5 + $0x280] sm:$0xff]  ;;  %v1250_v57 = vld [vmem:[%s3027_s5 + $0x288] sm:$0xff] }
 0x11f   :  { %v326_v49 = vrot.slane %v325_v46, 4  ;;  %332 = vst [vmem:[#allocation2 + $0xc] sm:$0xe] %v325_v46  ;;  %v327_v50 = vrot.slane %v1755_v48, 7  ;;  %v1186_v46 = vld [vmem:[%s3027_s5 + $0x88] sm:$0xff] }
 0x120   :  { %v2217_v48 = vld [vmem:[%s3025_s3 + $0x270] ss:$8 sps:$4 sm:$0xff]  }
 0x121   :  { %v328_v51 = vsel %vm2484_vm4, %v326_v49, %v327_v50  ;;  %v1002_v50 = vrot.slane %v2221_v44, 2  ;;  %v1241_v44 = vld [vmem:[%s3027_s5 + $0x240] sm:$0xff] }
 0x122   :  { %333 = vst [vmem:[#allocation2 + $0x10] sm:$0xf] %v328_v51 }
 0x129   :  { %v2147_v59 = vld [vmem:[#allocation2 + $0xc] sm:$0x7f]  }
 0x12a   :  { %v2501_v61 = vld [vmem:[#allocation2 + $0xc] sm:$0xfe]   ;;  %893 = vmatprep.mubr.bf16.mxu1 %v2147_v59  ;;  %1038 = vmatmul.mubr.bf16.vlgmr.msra.gmra.mrb[16].mxu0 %v2147_v59 }
 0x12b   :  { %1049 = vmatpush1.bf16.msra.mxu0 %v2144_v55  ;;  %894 = vmatmul.mubr.bf16.vlgmr.msra.gmra.mrb[0].mxu1 %v2148_v60  ;;  %v368_v63 = vrot.slane %v2501_v61, 1  ;;  %v2220_v43 = vld [vmem:[#allocation2 + $0xc] sm:$0xfc]   ;;  %v1188_v60 = vld [vmem:[%s3027_s5 + $0x98] sm:$0xff]  ;;  %v1233_v61 = vld [vmem:[%s3027_s5 + $0x200] sm:$0xff] }
 0x12c   :  { %905 = vmatpush1.bf16.msra.mxu1 %v2144_v55  ;;  %1080 = vmatprep.mubr.bf16.mxu0 %v2504_v62  ;;  %v1001_v49 = vrot.slane %v2220_v43, 2  ;;  %v1915_v55 = vpack.c.bf16 %v1170_v54, %v1169_v53  ;;  %v1187_v59 = vld [vmem:[%s3027_s5 + $0x90] sm:$0xff]  ;;  %v1196_v43 = vld [vmem:[%s3027_s5 + $0xd8] sm:$0xff] }
 0x12d   :  { %936 = vmatprep.mubr.bf16.mxu1 %v368_v63  ;;  %1050 = vmatprep.subr.bf16.mxu0 %v2153_v58  ;;  %v1260_v53 = vld [vmem:[%s3027_s5 + $0x2d8] sm:$0xff] }
 0x12e   :  { %906 = vmatprep.subr.bf16.mxu1 %v2153_v58  ;;  %v1003_v52 = vsel %vm191_vm1, %v1001_v49, %v1002_v50  ;;  %v1977_v58 = vpack.c.bf16 %v1250_v57, %v1249_v56  ;;  %v1180_v49 = vld [vmem:[%s3027_s5 + $0x58] sm:$0xff]  ;;  %v1198_v56 = vld [vmem:[%s3027_s5 + $0xe8] sm:$0xff]  ;;  %v1243_v57 = vld [vmem:[%s3027_s5 + $0x250] sm:$0xff] }
 0x12f   :  { %1051 = vmatpush1.bf16.msra.mxu0 %v2151_v0 }
 0x130   :  { %907 = vmatpush1.bf16.msra.mxu1 %v2151_v0  ;;  %1052 = vmatprep.subr.bf16.mxu0 %v2156_v1  ;;  %v1171_v0 = vld [vmem:[%s3027_s5 + $0x10] sm:$0xff] }
 0x131   :  { %908 = vmatprep.subr.bf16.mxu1 %v2156_v1  ;;  %v1172_v1 = vld [vmem:[%s3027_s5 + $0x18] sm:$0xff] }
 0x133   :  { %1053 = vmatpush1.bf16.msra.mxu0 %v2154_v2 }
 0x134   :  { %909 = vmatpush1.bf16.msra.mxu1 %v2154_v2  ;;  %1054 = vmatprep.subr.bf16.mxu0 %v2159_v3 }
 0x135   :  { %910 = vmatprep.subr.bf16.mxu1 %v2159_v3  ;;  %v1919_v3 = vpack.c.bf16 %v1172_v1, %v1171_v0  ;;  %v1261_v0 = vld [vmem:[%s3027_s5 + $0x2e0] sm:$0xff]  ;;  %v1262_v1 = vld [vmem:[%s3027_s5 + $0x2e8] sm:$0xff] }
 0x137   :  { %1055 = vmatpush1.bf16.msra.mxu0 %v2157_v4 }
 0x138   :  { %911 = vmatpush1.bf16.msra.mxu1 %v2157_v4  ;;  %1056 = vmatprep.subr.bf16.mxu0 %v2162_v5  ;;  %v1251_v4 = vld [vmem:[%s3027_s5 + $0x290] sm:$0xff] }
 0x139   :  { %912 = vmatprep.subr.bf16.mxu1 %v2162_v5  ;;  %v1252_v5 = vld [vmem:[%s3027_s5 + $0x298] sm:$0xff] }
 0x13b   :  { %1057 = vmatpush1.bf16.msra.mxu0 %v2160_v6 }
 0x13c   :  { %913 = vmatpush1.bf16.msra.mxu1 %v2160_v6  ;;  %1058 = vmatprep.subr.bf16.mxu0 %v2165_v7  ;;  %v1981_v6 = vpack.c.bf16 %v1252_v5, %v1251_v4  ;;  %v1200_v4 = vld [vmem:[%s3027_s5 + $0xf8] sm:$0xff]  ;;  %v1245_v5 = vld [vmem:[%s3027_s5 + $0x260] sm:$0xff] }
 0x13d   :  { %914 = vmatprep.subr.bf16.mxu1 %v2165_v7  ;;  %v1189_v7 = vld [vmem:[%s3027_s5 + $0xa0] sm:$0xff] }
 0x13f   :  { %1059 = vmatpush1.bf16.msra.mxu0 %v2163_v8 }
 0x140   :  { %915 = vmatpush1.bf16.msra.mxu1 %v2163_v8  ;;  %1060 = vmatprep.subr.bf16.mxu0 %v2168_v9  ;;  %v1190_v8 = vld [vmem:[%s3027_s5 + $0xa8] sm:$0xff] }
 0x141   :  { %916 = vmatprep.subr.bf16.mxu1 %v2168_v9  ;;  %v1235_v9 = vld [vmem:[%s3027_s5 + $0x210] sm:$0xff] }
 0x143   :  { %1061 = vmatpush1.bf16.msra.mxu0 %v2166_v10 }
 0x144   :  { %917 = vmatpush1.bf16.msra.mxu1 %v2166_v10  ;;  %1062 = vmatprep.subr.bf16.mxu0 %v2171_v11  ;;  %v1921_v10 = vpack.c.bf16 %v1190_v8, %v1189_v7 }
 0x145   :  { %918 = vmatprep.subr.bf16.mxu1 %v2171_v11  ;;  %v1236_v11 = vld [vmem:[%s3027_s5 + $0x218] sm:$0xff] }
 0x147   :  { %1063 = vmatpush1.bf16.msra.mxu0 %v2169_v12 }
 0x148   :  { %919 = vmatpush1.bf16.msra.mxu1 %v2169_v12  ;;  %1064 = vmatprep.subr.bf16.mxu0 %v2174_v13  ;;  %v1173_v12 = vld [vmem:[%s3027_s5 + $0x20] sm:$0xff] }
 0x149   :  { %920 = vmatprep.subr.bf16.mxu1 %v2174_v13  ;;  %v1983_v13 = vpack.c.bf16 %v1236_v11, %v1235_v9  ;;  %v1183_v9 = vld [vmem:[%s3027_s5 + $0x70] sm:$0xff] }
 0x14a   :  { %v1263_v11 = vld [vmem:[%s3027_s5 + $0x2f0] sm:$0xff] }
 0x14b   :  { %1065 = vmatpush1.bf16.msra.mxu0 %v2172_v14 }
 0x14c   :  { %921 = vmatpush1.bf16.msra.mxu1 %v2172_v14  ;;  %1066 = vmatprep.subr.bf16.mxu0 %v2177_v15  ;;  %v1174_v14 = vld [vmem:[%s3027_s5 + $0x28] sm:$0xff] }
 0x14d   :  { %922 = vmatprep.subr.bf16.mxu1 %v2177_v15  ;;  %v1923_v15 = vpack.c.bf16 %v1174_v14, %v1173_v12 }
 0x14f   :  { %1067 = vmatpush1.bf16.msra.mxu0 %v2175_v16 }
 0x150   :  { %923 = vmatpush1.bf16.msra.mxu1 %v2175_v16  ;;  %1068 = vmatprep.subr.bf16.mxu0 %v2180_v17  ;;  %v1253_v16 = vld [vmem:[%s3027_s5 + $0x2a0] sm:$0xff] }
 0x151   :  { %924 = vmatprep.subr.bf16.mxu1 %v2180_v17  ;;  %v1254_v17 = vld [vmem:[%s3027_s5 + $0x2a8] sm:$0xff] }
 0x153   :  { %1069 = vmatpush1.bf16.msra.mxu0 %v2178_v18 }
 0x154   :  { %925 = vmatpush1.bf16.msra.mxu1 %v2178_v18  ;;  %1070 = vmatprep.subr.bf16.mxu0 %v2183_v19  ;;  %v1985_v18 = vpack.c.bf16 %v1254_v17, %v1253_v16  ;;  %v1218_v16 = vld [vmem:[%s3027_s5 + $0x188] sm:$0xff]  ;;  %v1247_v17 = vld [vmem:[%s3027_s5 + $0x270] sm:$0xff] }
 0x155   :  { %926 = vmatprep.subr.bf16.mxu1 %v2183_v19  ;;  %v1191_v19 = vld [vmem:[%s3027_s5 + $0xb0] sm:$0xff] }
 0x157   :  { %1071 = vmatpush1.bf16.msra.mxu0 %v2181_v20 }
 0x158   :  { %927 = vmatpush1.bf16.msra.mxu1 %v2181_v20  ;;  %1072 = vmatprep.subr.bf16.mxu0 %v2186_v21  ;;  %v1192_v20 = vld [vmem:[%s3027_s5 + $0xb8] sm:$0xff] }
 0x159   :  { %928 = vmatprep.subr.bf16.mxu1 %v2186_v21  ;;  %v1237_v21 = vld [vmem:[%s3027_s5 + $0x220] sm:$0xff] }
 0x15b   :  { %1073 = vmatpush1.bf16.msra.mxu0 %v2184_v22 }
 0x15c   :  { %929 = vmatpush1.bf16.msra.mxu1 %v2184_v22  ;;  %1074 = vmatprep.subr.bf16.mxu0 %v2189_v23  ;;  %v1925_v22 = vpack.c.bf16 %v1192_v20, %v1191_v19  ;;  %v1248_v19 = vld [vmem:[%s3027_s5 + $0x278] sm:$0xff] }
 0x15d   :  { %930 = vmatprep.subr.bf16.mxu1 %v2189_v23  ;;  %v1238_v23 = vld [vmem:[%s3027_s5 + $0x228] sm:$0xff]  ;;  %v2007_v20 = vpack.c.bf16 %v1248_v19, %v1247_v17 }
 0x15e   :  { %v1210_v19 = vld [vmem:[%s3027_s5 + $0x148] sm:$0xff] }
 0x15f   :  { %1075 = vmatpush1.bf16.msra.mxu0 %v2187_v24 }
 0x160   :  { %931 = vmatpush1.bf16.msra.mxu1 %v2187_v24  ;;  %1076 = vmatprep.subr.bf16.mxu0 %v2192_v25  ;;  %v1175_v24 = vld [vmem:[%s3027_s5 + $0x30] sm:$0xff] }
 0x161   :  { %932 = vmatprep.subr.bf16.mxu1 %v2192_v25  ;;  %v1176_v25 = vld [vmem:[%s3027_s5 + $0x38] sm:$0xff] }
 0x163   :  { %1077 = vmatpush1.bf16.msra.mxu0 %v2190_v26 }
 0x164   :  { %933 = vmatpush1.bf16.msra.mxu1 %v2190_v26  ;;  %1078 = vmatprep.subr.bf16.mxu0 %v2195_v27  ;;  %v1987_v26 = vpack.c.bf16 %v1238_v23, %v1237_v21 }
 0x165   :  { %934 = vmatprep.subr.bf16.mxu1 %v2195_v27  ;;  %v1927_v27 = vpack.c.bf16 %v1176_v25, %v1175_v24 }
 0x167   :  { %1079 = vmatpush1.bf16.msra.mxu0 %v2193_v28 }
 0x168   :  { %935 = vmatpush1.bf16.msra.mxu1 %v2193_v28  ;;  %1091 = vmatprep.subr.bf16.mxu0 %v2198_v29  ;;  %v1255_v28 = vld [vmem:[%s3027_s5 + $0x2b0] sm:$0xff] }
 0x169   :  { %947 = vmatprep.subr.bf16.mxu1 %v2198_v29  ;;  %v1256_v29 = vld [vmem:[%s3027_s5 + $0x2b8] sm:$0xff] }
 0x16a   :  { %1081 = vmatmul.mubr.bf16.vlgmr.msra.gmra.mrb[16].mxu0 %v368_v63  ;;  %v1234_v63 = vld [vmem:[%s3027_s5 + $0x208] sm:$0xff] }
 0x16b   :  { %937 = vmatmul.mubr.bf16.vlgmr.msra.gmra.mrb[0].mxu1 %v2490_v45  ;;  %1092 = vmatpush1.bf16.msra.mxu0 %v2196_v30  ;;  %v1185_v45 = vld [vmem:[%s3027_s5 + $0x80] sm:$0xff]  ;;  %v1979_v2 = vpack.c.bf16 %v1234_v63, %v1233_v61  ;;  %v1182_v61 = vld [vmem:[%s3027_s5 + $0x68] sm:$0xff] }
 0x16c   :  { %948 = vmatpush1.bf16.msra.mxu1 %v2196_v30  ;;  %1093 = vmatprep.subr.bf16.mxu0 %v2201_v31  ;;  %v1913_v51 = vpack.c.bf16 %v1186_v46, %v1185_v45  ;;  %v1989_v30 = vpack.c.bf16 %v1256_v29, %v1255_v28  ;;  %v1242_v46 = vld [vmem:[%s3027_s5 + $0x248] sm:$0xff] }
 0x16d   :  { %949 = vmatprep.subr.bf16.mxu1 %v2201_v31  ;;  %1123 = vmatprep.mubr.bf16.mxu0 %v2248_v47  ;;  %v1193_v31 = vld [vmem:[%s3027_s5 + $0xc0] sm:$0xff]  ;;  %v1995_v50 = vpack.c.bf16 %v1242_v46, %v1241_v44 }
 0x16e   :  { %979 = vmatprep.mubr.bf16.mxu1 %v2248_v47  ;;  %v2210_v47 = vld [vmem:[%s3025_s3 + $0x244] ss:$8 sps:$4 sm:$0xff]  }
 0x16f   :  { %1094 = vmatpush1.bf16.msra.mxu0 %v2199_v32 }
 0x170   :  { %950 = vmatpush1.bf16.msra.mxu1 %v2199_v32  ;;  %1095 = vmatprep.subr.bf16.mxu0 %v2204_v33  ;;  %v1194_v32 = vld [vmem:[%s3027_s5 + $0xc8] sm:$0xff] }
 0x171   :  { %951 = vmatprep.subr.bf16.mxu1 %v2204_v33  ;;  %v1239_v33 = vld [vmem:[%s3027_s5 + $0x230] sm:$0xff] }
 0x173   :  { %1096 = vmatpush1.bf16.msra.mxu0 %v2202_v34 }
 0x174   :  { %952 = vmatpush1.bf16.msra.mxu1 %v2202_v34  ;;  %1097 = vmatprep.subr.bf16.mxu0 %v2207_v35  ;;  %v1929_v34 = vpack.c.bf16 %v1194_v32, %v1193_v31 }
 0x175   :  { %953 = vmatprep.subr.bf16.mxu1 %v2207_v35  ;;  %v1240_v35 = vld [vmem:[%s3027_s5 + $0x238] sm:$0xff] }
 0x177   :  { %1098 = vmatpush1.bf16.msra.mxu0 %v2205_v36 }
 0x178   :  { %954 = vmatpush1.bf16.msra.mxu1 %v2205_v36  ;;  %1099 = vmatprep.subr.bf16.mxu0 %v2210_v47  ;;  %v1177_v36 = vld [vmem:[%s3027_s5 + $0x40] sm:$0xff] }
 0x179   :  { %955 = vmatprep.subr.bf16.mxu1 %v2210_v47  ;;  %v1178_v47 = vld [vmem:[%s3027_s5 + $0x48] sm:$0xff] }
 0x17b   :  { %1100 = vmatpush1.bf16.msra.mxu0 %v2208_v37 }
 0x17c   :  { %956 = vmatpush1.bf16.msra.mxu1 %v2208_v37  ;;  %1101 = vmatprep.subr.bf16.mxu0 %v2213_v38  ;;  %v1991_v37 = vpack.c.bf16 %v1240_v35, %v1239_v33 }
 0x17d   :  { %957 = vmatprep.subr.bf16.mxu1 %v2213_v38  ;;  %v1931_v38 = vpack.c.bf16 %v1178_v47, %v1177_v36 }
 0x17f   :  { %1102 = vmatpush1.bf16.msra.mxu0 %v2211_v39 }
 0x180   :  { %958 = vmatpush1.bf16.msra.mxu1 %v2211_v39  ;;  %1103 = vmatprep.subr.bf16.mxu0 %v2216_v40  ;;  %v1257_v39 = vld [vmem:[%s3027_s5 + $0x2c0] sm:$0xff] }
 0x181   :  { %959 = vmatprep.subr.bf16.mxu1 %v2216_v40  ;;  %v1258_v40 = vld [vmem:[%s3027_s5 + $0x2c8] sm:$0xff] }
 0x183   :  { %1104 = vmatpush1.bf16.msra.mxu0 %v2214_v41 }
 0x184   :  { %960 = vmatpush1.bf16.msra.mxu1 %v2214_v41  ;;  %1105 = vmatprep.subr.bf16.mxu0 %v2219_v42  ;;  %v1993_v41 = vpack.c.bf16 %v1258_v40, %v1257_v39  ;;  %v2249_v39 = vmov 1983009808  }
 0x185   :  { %961 = vmatprep.subr.bf16.mxu1 %v2219_v42  ;;  %v1195_v42 = vld [vmem:[%s3027_s5 + $0xd0] sm:$0xff]  ;;  %v1292_v40 = vunpack.c.l.s4 %v2249_v39  ;;  %v1266_v39 = vld [vmem:[%s3027_s5 + $0x308] sm:$0xff] }
 0x186   :  { %v1933_v45 = vpack.c.bf16 %v1196_v43, %v1195_v42 }
 0x187   :  { %1106 = vmatpush1.bf16.msra.mxu0 %v2217_v48  ;;  %v1293_v43 = vunpack.c.0.s8 %v1292_v40 }
 0x188   :  { %962 = vmatpush1.bf16.msra.mxu1 %v2217_v48  ;;  %1978 = vmatprep.subr.bf16.mxu0 %v1977_v58  ;;  %v1179_v48 = vld [vmem:[%s3027_s5 + $0x50] sm:$0xff] }
 0x189   :  { %1914 = vmatprep.subr.bf16.mxu1 %v1913_v51  ;;  %v1935_v51 = vpack.c.bf16 %v1180_v49, %v1179_v48 }
 0x18a   :  { %1124 = vmatmul.mubr.bf16.vlgmr.msra.gmra.mrb[16].mxu0 %v1003_v52  ;;  %v1259_v52 = vld [vmem:[%s3027_s5 + $0x2d0] sm:$0xff] }
 0x18b   :  { %980 = vmatmul.mubr.bf16.vlgmr.msra.gmra.mrb[0].mxu1 %v2504_v62  ;;  %v1917_v62 = vpack.c.bf16 %v1188_v60, %v1187_v59  ;;  %1980 = vmatpush3.bf16.msra.mxu0 %v1979_v2  ;;  %v1997_v54 = vpack.c.bf16 %v1260_v53, %v1259_v52  ;;  %v1244_v59 = vld [vmem:[%s3027_s5 + $0x258] sm:$0xff]  ;;  %v1181_v60 = vld [vmem:[%s3027_s5 + $0x60] sm:$0xff]  ;;  %v1199_v2 = vld [vmem:[%s3027_s5 + $0xf0] sm:$0xff] }
 0x18c   :  { %1916 = vmatpush3.bf16.msra.mxu1 %v1915_v55  ;;  %1982 = vmatprep.subr.bf16.mxu0 %v1981_v6  ;;  %v1197_v55 = vld [vmem:[%s3027_s5 + $0xe0] sm:$0xff]  ;;  %v1939_v63 = vpack.c.bf16 %v1182_v61, %v1181_v60  ;;  %v1246_v6 = vld [vmem:[%s3027_s5 + $0x268] sm:$0xff]  ;;  %v1941_v7 = vpack.c.bf16 %v1200_v4, %v1199_v2 }
 0x18d   :  { %1918 = vmatprep.subr.bf16.mxu1 %v1917_v62  ;;  %v1937_v58 = vpack.c.bf16 %v1198_v56, %v1197_v55  ;;  %v1999_v62 = vpack.c.bf16 %v1244_v59, %v1243_v57  ;;  %v2003_v8 = vpack.c.bf16 %v1246_v6, %v1245_v5  ;;  %v1220_v55 = vld [vmem:[%s3027_s5 + $0x198] sm:$0xff]  ;;  %v1221_v2 = vld [vmem:[%s3027_s5 + $0x1a0] sm:$0xff] }
 0x18e   :  { %v1205_v6 = vld [vmem:[%s3027_s5 + $0x120] sm:$0xff] }
 0x18f   :  { %1984 = vmatpush3.bf16.msra.mxu0 %v1983_v13  ;;  %v1264_v13 = vld [vmem:[%s3027_s5 + $0x2f8] sm:$0xff] }
 0x190   :  { %1920 = vmatpush3.bf16.msra.mxu1 %v1919_v3  ;;  %1986 = vmatprep.subr.bf16.mxu0 %v1985_v18  ;;  %v2001_v3 = vpack.c.bf16 %v1262_v1, %v1261_v0  ;;  %v2005_v14 = vpack.c.bf16 %v1264_v13, %v1263_v11  ;;  %v1208_v13 = vld [vmem:[%s3027_s5 + $0x138] sm:$0xff] }
 0x191   :  { %1922 = vmatprep.subr.bf16.mxu1 %v1921_v10  ;;  %v1184_v10 = vld [vmem:[%s3027_s5 + $0x78] sm:$0xff] }
 0x192   :  { %v1943_v12 = vpack.c.bf16 %v1184_v10, %v1183_v9  ;;  %v1224_v9 = vld [vmem:[%s3027_s5 + $0x1b8] sm:$0xff] }
 0x193   :  { %1988 = vmatpush3.bf16.msra.mxu0 %v1987_v26 }
 0x194   :  { %1924 = vmatpush3.bf16.msra.mxu1 %v1923_v15  ;;  %1990 = vmatprep.subr.bf16.mxu0 %v1989_v30  ;;  %v1217_v15 = vld [vmem:[%s3027_s5 + $0x180] sm:$0xff] }
 0x195   :  { %1926 = vmatprep.subr.bf16.mxu1 %v1925_v22  ;;  %v1945_v18 = vpack.c.bf16 %v1218_v16, %v1217_v15  ;;  %v1750_v30 = vld [vmem:[%s3026_s4] ss:$0 sm:$0xff]  ;;  %v1226_v15 = vld [vmem:[%s3027_s5 + $0x1c8] sm:$0xff] }
 0x197   :  { %1992 = vmatpush3.bf16.msra.mxu0 %v1991_v37 }
 0x198   :  { %1928 = vmatpush3.bf16.msra.mxu1 %v1927_v27  ;;  %1994 = vmatprep.subr.bf16.mxu0 %v1993_v41  ;;  %v1294_v41 = vlaneseq }
 0x199   :  { %1930 = vmatprep.subr.bf16.mxu1 %v1929_v34 }
 0x19a   :  { %v1295_v44 = vshrl.u32 %v1294_v41, 7  ;;  %v2250_v41 = vmov 0.0|0.0  }
 0x19b   :  { %1996 = vmatpush3.bf16.msra.mxu0 %v1995_v50  ;;  %v1201_v50 = vld [vmem:[%s3027_s5 + $0x100] sm:$0xff] }
 0x19c   :  { %1932 = vmatpush3.bf16.msra.mxu1 %v1931_v38  ;;  %1998 = vmatprep.subr.bf16.mxu0 %v1997_v54  ;;  %v2853_v48 = vsub.s32 %v1293_v43, %v1295_v44  ;;  %v1219_v54 = vld [vmem:[%s3027_s5 + $0x190] sm:$0xff]  ;;  %v1268_v43 = vld [vmem:[%s3027_s5 + $0x318] sm:$0xff] }
 0x19d   :  { %1934 = vmatprep.subr.bf16.mxu1 %v1933_v45  ;;  %v1949_v61 = vpack.c.bf16 %v1220_v55, %v1219_v54  ;;  %v1273_v54 = vld [vmem:[%s3027_s5 + $0x340] sm:$0xff]  ;;  %v1274_v55 = vld [vmem:[%s3027_s5 + $0x348] sm:$0xff] }
 0x19f   :  { %2000 = vmatpush3.bf16.msra.mxu0 %v1999_v62  ;;  %v1203_v62 = vld [vmem:[%s3027_s5 + $0x110] sm:$0xff] }
 0x1a0   :  { %1936 = vmatpush3.bf16.msra.mxu1 %v1935_v51  ;;  %2002 = vmatprep.subr.bf16.mxu0 %v2001_v3  ;;  %v1202_v51 = vld [vmem:[%s3027_s5 + $0x108] sm:$0xff] }
 0x1a1   :  { %1938 = vmatprep.subr.bf16.mxu1 %v1937_v58  ;;  %v1947_v58 = vpack.c.bf16 %v1202_v51, %v1201_v50  ;;  %v1222_v3 = vld [vmem:[%s3027_s5 + $0x1a8] sm:$0xff]  ;;  %v1271_v51 = vld [vmem:[%s3027_s5 + $0x330] sm:$0xff] }
 0x1a2   :  { %v1953_v5 = vpack.c.bf16 %v1222_v3, %v1221_v2 }
 0x1a3   :  { %2004 = vmatpush3.bf16.msra.mxu0 %v2003_v8  ;;  %v1223_v8 = vld [vmem:[%s3027_s5 + $0x1b0] sm:$0xff] }
 0x1a4   :  { %1940 = vmatpush3.bf16.msra.mxu1 %v1939_v63  ;;  %2006 = vmatprep.subr.bf16.mxu0 %v2005_v14  ;;  %v1204_v63 = vld [vmem:[%s3027_s5 + $0x118] sm:$0xff]  ;;  %v1957_v11 = vpack.c.bf16 %v1224_v9, %v1223_v8  ;;  %v1225_v14 = vld [vmem:[%s3027_s5 + $0x1c0] sm:$0xff] }
 0x1a5   :  { %1942 = vmatprep.subr.bf16.mxu1 %v1941_v7  ;;  %v1951_v4 = vpack.c.bf16 %v1204_v63, %v1203_v62  ;;  %v1206_v7 = vld [vmem:[%s3027_s5 + $0x128] sm:$0xff]  ;;  %v1961_v17 = vpack.c.bf16 %v1226_v15, %v1225_v14 }
 0x1a6   :  { %v1955_v10 = vpack.c.bf16 %v1206_v7, %v1205_v6  ;;  %v1278_v62 = vld [vmem:[%s3027_s5 + $0x368] sm:$0xff] }
 0x1a7   :  { %2008 = vmatpush3.bf16.msra.mxu0 %v2007_v20  ;;  %v1227_v20 = vld [vmem:[%s3027_s5 + $0x1d0] sm:$0xff] }
 0x1a8   :  { %1944 = vmatpush3.bf16.msra.mxu1 %v1943_v12  ;;  %v1207_v12 = vld [vmem:[%s3027_s5 + $0x130] sm:$0xff] }
 0x1a9   :  { %1946 = vmatprep.subr.bf16.mxu1 %v1945_v18  ;;  %v1959_v16 = vpack.c.bf16 %v1208_v13, %v1207_v12  ;;  %v1209_v18 = vld [vmem:[%s3027_s5 + $0x140] sm:$0xff] }
 0x25d   :  { %v1125_v21 = vpop.f32.mrb[16].mxu0 }
 0x25e   :  { %v981_v22 = vpop.f32.mrb[0].mxu1  ;;  %v1127_v23 = vpop.f32.mrb[17].mxu0 }
 0x25f   :  { %v1134_v24 = vmax.f32 %v981_v22, %v1125_v21  ;;  %v983_v25 = vpop.f32.mrb[1].mxu1  ;;  %v1129_v26 = vpop.f32.mrb[18].mxu0  ;;  %v1228_v21 = vld [vmem:[%s3027_s5 + $0x1d8] sm:$0xff]  ;;  %v1963_v22 = vpack.c.bf16 %v1210_v19, %v1209_v18 }
 0x260   :  { %v1135_v27 = vmax.f32 %v983_v25, %v1127_v23  ;;  %v985_v28 = vpop.f32.mrb[2].mxu1  ;;  %v1131_v29 = vpop.f32.mrb[19].mxu0  ;;  %v1965_v23 = vpack.c.bf16 %v1228_v21, %v1227_v20  ;;  %v1212_v25 = vld [vmem:[%s3027_s5 + $0x158] sm:$0xff] }
 0x261   :  { %v1136_v31 = vmax.f32 %v985_v28, %v1129_v26  ;;  %v987_v32 = vpop.f32.mrb[3].mxu1  ;;  %v1229_v26 = vld [vmem:[%s3027_s5 + $0x1e0] sm:$0xff] }
 0x262   :  { %v1138_v33 = vmax.f32 %v1134_v24, %v1135_v27  ;;  %v1137_v34 = vmax.f32 %v987_v32, %v1131_v29  ;;  %v1211_v24 = vld [vmem:[%s3027_s5 + $0x150] sm:$0xff]  ;;  %v1230_v27 = vld [vmem:[%s3027_s5 + $0x1e8] sm:$0xff] }
 0x263   :  { %v1967_v28 = vpack.c.bf16 %v1212_v25, %v1211_v24  ;;  %v1969_v29 = vpack.c.bf16 %v1230_v27, %v1229_v26  ;;  %v1231_v32 = vld [vmem:[%s3027_s5 + $0x1f0] sm:$0xff] }
 0x264   :  { %v1147_v35 = vadd.f32 %v1750_v30, %v1138_v33  ;;  %v1139_v36 = vmax.f32 %v1136_v31, %v1137_v34  ;;  %v1214_v31 = vld [vmem:[%s3027_s5 + $0x168] sm:$0xff]  ;;  %v1232_v33 = vld [vmem:[%s3027_s5 + $0x1f8] sm:$0xff] }
 0x266   :  { %v1149_v47 = vmax.f32 %v1147_v35, 0.0  ;;  %v1148_v37 = vadd.f32 %v1750_v30, %v1139_v36  ;;  %v1213_v30 = vld [vmem:[%s3027_s5 + $0x160] sm:$0xff]  ;;  %v1973_v35 = vpack.c.bf16 %v1232_v33, %v1231_v32  ;;  %v1215_v36 = vld [vmem:[%s3027_s5 + $0x170] sm:$0xff] }
 0x267   :  { %v1971_v34 = vpack.c.bf16 %v1214_v31, %v1213_v30 }
 0x268   :  { %1151 = vst [vmem:[#allocation3] sm:$0xff] %v1149_v47  ;;  %v1150_v38 = vmax.f32 %v1148_v37, 0.0  ;;  %v1216_v47 = vld [vmem:[%s3027_s5 + $0x178] sm:$0xff] }
 0x269   :  { %v1975_v37 = vpack.c.bf16 %v1216_v47, %v1215_v36 }
 0x26a   :  { %1152 = vst [vmem:[#allocation3 + $0x8] sm:$0x3f] %v1150_v38  ;;  %v1265_v38 = vld [vmem:[%s3027_s5 + $0x300] sm:$0xff] }
 0x26b   :  { %v2010_v40 = vpack.c.bf16 %v1266_v39, %v1265_v38 }
 0x26f   :  { %v1153_v42 = vld [vmem:[#allocation3] sm:$0xff]  }
 0x270   :  { %1154 = vst [vmem:[#allocation4] sm:$0xff] %v1153_v42   ;;  %v1267_v42 = vld [vmem:[%s3027_s5 + $0x310] sm:$0xff] }
 0x271   :  { %v1161_v45 = vld [vmem:[#allocation3 + $0x8] sm:$0xf]   ;;  %v1165_v46 = vld [vmem:[#allocation3 + $0xc] sm:$0x3]  ;;  %v2013_v44 = vpack.c.bf16 %v1268_v43, %v1267_v42 }
 0x272   :  { %1162 = vst [vmem:[#allocation4 + $0x8] sm:$0xf] %v1161_v45   ;;  %1166 = vst [vmem:[#allocation4 + $0xc] sm:$0x3] %v1165_v46  ;;  %v2252_v45 = vmov 0.0   ;;  %v1269_v46 = vld [vmem:[%s3027_s5 + $0x320] sm:$0xff] }
 0x277   :  { %v1167_v49 = vld [vmem:[#allocation4] sm:$0xff] }
 0x278   :  { %v1297_v52 = vrot.slane %v1167_v49, %v2853_v48  ;;  %v1290_v53 = vcombine.high %v1167_v49, %v1167_v49  ;;  %v1270_v49 = vld [vmem:[%s3027_s5 + $0x328] sm:$0xff] }
 0x279   :  { %v2868_v56 = vld [vmem:[#allocation4 + $0x8] sm:$0x3f]  ;;  %v2016_v50 = vpack.c.bf16 %v1270_v49, %v1269_v46 }
 0x27a   :  { %v1305_v57 = vcombine.high %v1297_v52, %v1297_v52  ;;  %v2871_v59 = vrot.slane %v1290_v53, %v2853_v48  ;;  %v1314_v60 = vrot.slane %v2868_v56, %v2853_v48  ;;  %v1307_v3 = vcombine.high %v2868_v56, %v2868_v56 }
 0x27c   :  { %1394 = vmatprep.mubr.f32.mxu1 %v1305_v57  ;;  %v1306_v0 = vcombine.high %v2871_v59, %v2871_v59  ;;  %v1322_v1 = vcombine.high %v1314_v60, %v1314_v60  ;;  %v2022_v57 = vpack.c.bf16 %v1274_v55, %v1273_v54 }
 0x27d   :  { %1395 = vmatmul.mubr.f32.vlgmr.msra.gmra.mrb[4].mxu1 %v1297_v52  ;;  %v1272_v52 = vld [vmem:[%s3027_s5 + $0x338] sm:$0xff] }
 0x27e   :  { %1948 = vmatpush3.bf16.msra.mxu1 %v1947_v58  ;;  %1464 = vmatprep.mubr.f32.mxu1 %v1306_v0  ;;  %v2019_v53 = vpack.c.bf16 %v1272_v52, %v1271_v51  ;;  %v1275_v58 = vld [vmem:[%s3027_s5 + $0x350] sm:$0xff] }
 0x27f   :  { %1534 = vmatprep.mubr.f32.mxu0 %v1322_v1  ;;  %1950 = vmatprep.subr.bf16.mxu1 %v1949_v61  ;;  %v1277_v61 = vld [vmem:[%s3027_s5 + $0x360] sm:$0xff]  ;;  %v1279_v0 = vld [vmem:[%s3027_s5 + $0x370] sm:$0xff]  ;;  %v1280_v1 = vld [vmem:[%s3027_s5 + $0x378] sm:$0xff] }
 0x280   :  { %1535 = vmatmul.mubr.f32.vlgmr.msra.gmra.mrb[20].mxu0 %v1314_v60  ;;  %v2028_v63 = vpack.c.bf16 %v1278_v62, %v1277_v61  ;;  %v2031_v2 = vpack.c.bf16 %v1280_v1, %v1279_v0 }
 0x282   :  { %1952 = vmatpush3.bf16.msra.mxu1 %v1951_v4  ;;  %v1321_v4 = vrot.slane %v1307_v3, %v2853_v48 }
 0x283   :  { %1954 = vmatprep.subr.bf16.mxu1 %v1953_v5 }
 0x286   :  { %1956 = vmatpush3.bf16.msra.mxu1 %v1955_v10 }
 0x287   :  { %1958 = vmatprep.subr.bf16.mxu1 %v1957_v11  ;;  %v1751_v11 = vld [vmem:[%s3028_s6] ss:$0 sm:$0xff] }
 0x28a   :  { %1960 = vmatpush3.bf16.msra.mxu1 %v1959_v16 }
 0x28b   :  { %1962 = vmatprep.subr.bf16.mxu1 %v1961_v17 }
 0x28e   :  { %1964 = vmatpush3.bf16.msra.mxu1 %v1963_v22 }
 0x28f   :  { %1966 = vmatprep.subr.bf16.mxu1 %v1965_v23 }
 0x292   :  { %1968 = vmatpush3.bf16.msra.mxu1 %v1967_v28 }
 0x293   :  { %1970 = vmatprep.subr.bf16.mxu1 %v1969_v29 }
 0x296   :  { %1972 = vmatpush3.bf16.msra.mxu1 %v1971_v34 }
 0x297   :  { %1974 = vmatprep.subr.bf16.mxu1 %v1973_v35 }
 0x29a   :  { %1976 = vmatpush3.bf16.msra.mxu1 %v1975_v37 }
 0x29b   :  { %2009 = vmatprep.subr.bf16.mxu1 %v2250_v41 }
 0x29d   :  { %1465 = vmatmul.mubr.f32.vlgmr.msra.gmra.mrb[6].mxu1 %v2871_v59  ;;  %v1276_v59 = vld [vmem:[%s3027_s5 + $0x358] sm:$0xff]  ;;  %s2253_s5 = smov [#allocation5]  }
 0x29e   :  { %2011 = vmatpush3.bf16.msra.mxu1 %v2010_v40  ;;  %1910 = vmatprep.mubr.msk.f32.mxu1 %vm2251_vm5, %v2252_v45  ;;  %v2025_v60 = vpack.c.bf16 %v1276_v59, %v1275_v58  ;;  %s1618_s21 = sshll.u32 %s2253_s5, 4  ;;  %s1619_s21 = int_to_ptr.vmem [resolvable:$true] %s1618_s21 }
 0x29f   :  { %2012 = vmatprep.subr.bf16.mxu1 %v2250_v41  ;;  %s2224_s22 = scalar_lea.vmem %s1619_s21, 32  ;;  %p2229_p1 = scmp.lt.s32.totalorder %s1619_s21, %s1619_s21 }
 0x2a0   :  { %p2225_p0 = scmp.ne.s32.totalorder %s1619_s21, %s2224_s22  ;;  %p2230_p2 = scmp.lt.s32.totalorder %s2224_s22, %s2224_s22 }
 0x2a2   :  { %2014 = vmatpush3.bf16.msra.mxu1 %v2013_v44  ;;  %p2231_p3 = por %p2230_p2, %p2229_p1 }
 0x2a3   :  { %2015 = vmatprep.subr.bf16.mxu1 %v2250_v41 }
 0x2a4   :  { %p2232_p4 = pnand %p2231_p3, %p2225_p0 }
 0x2a6   :  { %2017 = vmatpush3.bf16.msra.mxu1 %v2016_v50 }
 0x2a7   :  { %2018 = vmatprep.subr.bf16.mxu1 %v2250_v41 }
 0x2aa   :  { %2020 = vmatpush3.bf16.msra.mxu1 %v2019_v53 }
 0x2ab   :  { %2021 = vmatprep.subr.bf16.mxu1 %v2250_v41 }
 0x2ae   :  { %2023 = vmatpush3.bf16.msra.mxu1 %v2022_v57 }
 0x2af   :  { %2024 = vmatprep.subr.bf16.mxu1 %v2250_v41 }
 0x2b2   :  { %2026 = vmatpush3.bf16.msra.mxu1 %v2025_v60 }
 0x2b3   :  { %2027 = vmatprep.subr.bf16.mxu1 %v2250_v41 }
 0x2b6   :  { %2029 = vmatpush3.bf16.msra.mxu1 %v2028_v63 }
 0x2b7   :  { %2030 = vmatprep.subr.bf16.mxu1 %v2250_v41 }
 0x2ba   :  { %2032 = vmatpush3.bf16.msra.mxu1 %v2031_v2 }
 0x2bd   :  { %1911 = vmatmul.mubr.f32.vlgmr.msra.gmra.mrb[8].mxu1 %v1321_v4 }
 0x350   :  { %v1788_v5 = vpop.f32.mrb[4].mxu1 }
 0x351   :  { %v1789_v6 = vpop.f32.mrb[5].mxu1 }
 0x352   :  { %v1790_v7 = vadd.f32 %v1789_v6, %v1788_v5 }
 0x353   :  { %v1858_v8 = vpop.f32.mrb[20].mxu0 }
 0x354   :  { %v1859_v9 = vpop.f32.mrb[21].mxu0  ;;  %v1397_v14 = vadd.f32 %v1790_v7, %v1751_v11 }
 0x355   :  { %v1860_v10 = vadd.f32 %v1859_v9, %v1858_v8 }
 0x370   :  { %v1823_v12 = vpop.f32.mrb[6].mxu1 }
 0x371   :  { %v1824_v13 = vpop.f32.mrb[7].mxu1 }
 0x372   :  { %v1825_v15 = vadd.f32 %v1824_v13, %v1823_v12 }
 0x374   :  { %v1467_v56 = vadd.f32 %v1825_v15, %v1397_v14 }
 0x376   :  { %v1537_v16 = vadd.f32 %v1860_v10, %v1467_v56 }
 0x390   :  { %v1606_v48 = vpop.f32.mrb[8].mxu1 }
 0x391   :  { %v1607_v17 = vadd.f32 %v1606_v48, %v1537_v16  ;;  %v1912_v18 = vpop.f32.mrb[9].mxu1 }
 0x393   :  { %1611 = vst.msk [vmem:[#allocation5] sm:$0x3] %vm1610_vm6, %v1607_v17 }
 0x394   :  { %2235 = shalt.err (!%p2232_p4)
}
 0x395   :  { %s2236_s2 = scalar_lea.hbm %s3029_s7, 32 }
 0x396   :  { %p2237_p5 = scmp.ne.s32.totalorder %s3029_s7, %s2236_s2  ;;  %p2240_p6 = scmp.lt.u32.totalorder %s2236_s2, %s3029_s7 }
 0x398   :  { %p2242_p7 = pnand %p2240_p6, %p2237_p5 }
 0x39a   :  { %2245 = shalt.err (!%p2242_p7)
}
 0x39b   :  { %1621 = dma.vmem_to_hbm [thread:$0]  %s1619_s21, 32, %s3029_s7, [#allocation6]  }
 0x39c   :  { %2246 = dma.done.wait [#allocation6], 32  }
 0x39d   :  { %2247 = vsyncadd [#allocation6], 4294967264 }
 0x39e   :  { %1625 = vsyncpa [#allocation6], 1 }

</bundles_post_ra>
